<compile_context>
chip_gen: v7x
topology: tpu7x:2x2x1
jax: 0.10.0
libtpu: 0.0.40
codegen_flags: <defaults>
</compile_context>

<pallas_src>
import functools
import math

import jax
import jax.numpy as jnp
from jax.experimental import pallas as pl
from jax.experimental.pallas import tpu as pltpu


def _cross_attn_kernel(x_ref, ctx_ref, gamma_ref, beta_ref,
                       wq_ref, wk_ref, wv_ref, bq_ref, bk_ref, bv_ref,
                       wo_ref, bo_ref, o_ref, k_cache, v_cache, *, n_heads):
    x = x_ref[...].astype(jnp.float32)          # (Tq, D) query rows (= residual)
    Tq, D = x.shape
    Dh = D // n_heads
    Lkv = k_cache.shape[0]
    scale = 1.0 / math.sqrt(Dh)

    # --- K/V projections: computed once per batch element, cached in bf16 scratch ---
    @pl.when(pl.program_id(1) == 0)
    def _():
        ctx_b = ctx_ref[...]                                            # (Lkv, D) bf16
        k = jnp.dot(ctx_b, wk_ref[...], preferred_element_type=jnp.float32) + bk_ref[...]
        v = jnp.dot(ctx_b, wv_ref[...], preferred_element_type=jnp.float32) + bv_ref[...]
        k_cache[...] = k.astype(jnp.bfloat16)
        v_cache[...] = v.astype(jnp.bfloat16)

    # --- LayerNorm(dim, eps=1e-5) on the query stream only ---
    mu = jnp.mean(x, axis=-1, keepdims=True)
    var = jnp.mean((x - mu) ** 2, axis=-1, keepdims=True)
    xn = (x - mu) * jax.lax.rsqrt(var + 1e-5)
    xn = xn * gamma_ref[...] + beta_ref[...]

    # --- Q projection (bf16 MXU inputs, f32 accumulation); fold 1/sqrt(Dh) into q once ---
    q = jnp.dot(xn.astype(jnp.bfloat16), wq_ref[...],
                preferred_element_type=jnp.float32) + bq_ref[...]
    q = q * scale

    # --- single head split (reshape + layout-aware permute), then batched attention ---
    qh = pltpu.einshape("qhd->hqd", q.astype(jnp.bfloat16).reshape(Tq, n_heads, Dh))
    kh = pltpu.einshape("khd->hkd", k_cache[...].reshape(Lkv, n_heads, Dh))
    vh = pltpu.einshape("khd->hkd", v_cache[...].reshape(Lkv, n_heads, Dh))

    s = jnp.einsum("hqd,hkd->hqk", qh, kh,
                   preferred_element_type=jnp.float32)                  # (H, Tq, Lkv)
    m = jnp.max(s, axis=-1, keepdims=True)
    e = jnp.exp(s - m)
    p = e * pl.reciprocal(jnp.sum(e, axis=-1, keepdims=True), approx=True)
    o = jnp.einsum("hqk,hkd->hqd", p.astype(jnp.bfloat16), vh,
                   preferred_element_type=jnp.float32)                  # (H, Tq, Dh)
    attn = pltpu.einshape("hqd->qhd", o).reshape(Tq, D)                 # (Tq, D)

    # --- out_proj + residual ---
    out = jnp.dot(attn.astype(jnp.bfloat16), wo_ref[...],
                  preferred_element_type=jnp.float32) + bo_ref[...]
    o_ref[...] = (x + out).astype(o_ref.dtype)


def cross_attention_block(x, context, params, n_heads, *, q_block=None):
    B, Lq, D = x.shape
    Bc, Lkv, Dc = context.shape
    assert Bc == B and Dc == D and D % n_heads == 0

    if q_block is None:
        q_block = Lq if Lq <= 256 else 256       # bounded tiles at realistic Lq
    assert Lq % q_block == 0, f"Lq={Lq} must be divisible by q_block={q_block}"
    nq = Lq // q_block

    # Cast MXU operands to bf16 once, outside the kernel (halves DMA bytes + VMEM).
    wq = params["wq"].astype(jnp.bfloat16)
    wk = params["wk"].astype(jnp.bfloat16)
    wv = params["wv"].astype(jnp.bfloat16)
    wo = params["wo"].astype(jnp.bfloat16)
    ctx = context.astype(jnp.bfloat16)

    # Constant-index operands: resident across the grid, single-buffered (Buffered(1)
    # halves their VMEM since there is nothing to pipeline).
    def const(shape):
        return pl.BlockSpec(shape, lambda b, qi: (0, 0), pipeline_mode=pl.Buffered(1))

    # Size the scoped-VMEM limit to the actual buffers (weights single-buffered,
    # x/out tiles + context double-buffered, bf16 K/V scratch, f32 intermediates).
    vmem_bytes = (4 * D * D * 2 + 8 * D * 4                 # bf16 weights + f32 vec params
                  + 2 * 2 * q_block * D * 4                 # x + out tiles (double-buffered)
                  + 2 * Lkv * D * 2                         # context (double-buffered, bf16)
                  + 2 * Lkv * D * 2                         # K/V scratch (bf16)
                  + 4 * n_heads * q_block * Lkv * 4         # scores / probs (f32)
                  + 6 * q_block * D * 4)                    # q / attn / residual (f32)
    vmem_limit = int(min(max(2 * vmem_bytes, 16 << 20), 64 << 20))

    kernel = functools.partial(_cross_attn_kernel, n_heads=n_heads)
    return pl.pallas_call(
        kernel,
        out_shape=jax.ShapeDtypeStruct((B, Lq, D), x.dtype),
        grid=(B, nq),
        in_specs=[
            pl.BlockSpec((None, q_block, D), lambda b, qi: (b, qi, 0)),   # x (query rows)
            pl.BlockSpec((None, Lkv, D), lambda b, qi: (b, 0, 0)),        # context (bf16)
            const((1, D)),        # layernorm gamma
            const((1, D)),        # layernorm beta
            const((D, D)),        # Wq (bf16)
            const((D, D)),        # Wk
            const((D, D)),        # Wv
            const((1, D)),        # bq
            const((1, D)),        # bk
            const((1, D)),        # bv
            const((D, D)),        # Wo (out_proj, bf16)
            const((1, D)),        # bo
        ],
        out_specs=pl.BlockSpec((None, q_block, D), lambda b, qi: (b, qi, 0)),
        scratch_shapes=[
            pltpu.VMEM((Lkv, D), jnp.bfloat16),   # cached K projection (per batch element)
            pltpu.VMEM((Lkv, D), jnp.bfloat16),   # cached V projection
        ],
        compiler_params=pltpu.CompilerParams(
            dimension_semantics=("parallel", "arbitrary"),
            vmem_limit_bytes=vmem_limit),
    )(x, ctx, params["gamma"], params["beta"],
      wq, wk, wv, params["bq"], params["bk"], params["bv"],
      wo, params["bo"])


def init_params(key, dim):
    ks = jax.random.split(key, 8)
    s = 1.0 / math.sqrt(dim)
    return {
        "gamma": jnp.ones((1, dim), jnp.float32),
        "beta":  jnp.zeros((1, dim), jnp.float32),
        "wq": s * jax.random.normal(ks[0], (dim, dim), jnp.float32),
        "wk": s * jax.random.normal(ks[1], (dim, dim), jnp.float32),
        "wv": s * jax.random.normal(ks[2], (dim, dim), jnp.float32),
        "wo": s * jax.random.normal(ks[3], (dim, dim), jnp.float32),
        "bq": 0.02 * jax.random.normal(ks[4], (1, dim), jnp.float32),
        "bk": 0.02 * jax.random.normal(ks[5], (1, dim), jnp.float32),
        "bv": 0.02 * jax.random.normal(ks[6], (1, dim), jnp.float32),
        "bo": 0.02 * jax.random.normal(ks[7], (1, dim), jnp.float32),
    }


def reference(x, context, params, n_heads):
    """Pure-JAX (f32) reference mirroring the PyTorch forward."""
    B, Lq, D = x.shape
    Lkv = context.shape[1]
    Dh = D // n_heads
    mu = jnp.mean(x, axis=-1, keepdims=True)
    var = jnp.mean((x - mu) ** 2, axis=-1, keepdims=True)
    xn = (x - mu) / jnp.sqrt(var + 1e-5) * params["gamma"][0] + params["beta"][0]
    q = xn @ params["wq"] + params["bq"][0]
    k = context @ params["wk"] + params["bk"][0]
    v = context @ params["wv"] + params["bv"][0]
    qh = q.reshape(B, Lq, n_heads, Dh).transpose(0, 2, 1, 3)
    kh = k.reshape(B, Lkv, n_heads, Dh).transpose(0, 2, 1, 3)
    vh = v.reshape(B, Lkv, n_heads, Dh).transpose(0, 2, 1, 3)
    s = jnp.einsum("bhqd,bhkd->bhqk", qh, kh) / math.sqrt(Dh)
    p = jax.nn.softmax(s, axis=-1)
    o = jnp.einsum("bhqk,bhkd->bhqd", p, vh)
    o = o.transpose(0, 2, 1, 3).reshape(B, Lq, D)
    return x + o @ params["wo"] + params["bo"][0]


if __name__ == "__main__":
    B, Lq, Lkv, dim, n_heads = 2, 8, 16, 128, 8
    key = jax.random.PRNGKey(0)
    kx, kc, kp = jax.random.split(key, 3)
    x = jax.random.normal(kx, (B, Lq, dim), jnp.float32)
    context = jax.random.normal(kc, (B, Lkv, dim), jnp.float32)
    params = init_params(kp, dim)

    out = jax.block_until_ready(cross_attention_block(x, context, params, n_heads))
    ref = jax.block_until_ready(reference(x, context, params, n_heads))
    assert out.shape == (B, Lq, dim)
    err = jnp.max(jnp.abs(out - ref))
    # bf16 MXU inputs / bf16 K-V cache (f32 accumulation) vs f32 reference -> loose tol.
    assert err < 5e-2, f"max abs err {err}"
    print("KERNEL_OK")
</pallas_src>

<mosaic_0001>
module attributes {stable_mosaic.version = 11 : i64} {
  func.func @_cross_attn_kernel(%arg0: i32, %arg1: i32, %arg2: memref<1x8x128xf32, #tpu.memory_space<vmem>>, %arg3: memref<1x16x128xbf16, #tpu.memory_space<vmem>>, %arg4: memref<1x128xf32, #tpu.memory_space<vmem>>, %arg5: memref<1x128xf32, #tpu.memory_space<vmem>>, %arg6: memref<128x128xbf16, #tpu.memory_space<vmem>>, %arg7: memref<128x128xbf16, #tpu.memory_space<vmem>>, %arg8: memref<128x128xbf16, #tpu.memory_space<vmem>>, %arg9: memref<1x128xf32, #tpu.memory_space<vmem>>, %arg10: memref<1x128xf32, #tpu.memory_space<vmem>>, %arg11: memref<1x128xf32, #tpu.memory_space<vmem>>, %arg12: memref<128x128xbf16, #tpu.memory_space<vmem>>, %arg13: memref<1x128xf32, #tpu.memory_space<vmem>>, %arg14: memref<1x8x128xf32, #tpu.memory_space<vmem>>, %arg15: memref<16x128xbf16, #tpu.memory_space<vmem>>, %arg16: memref<16x128xbf16, #tpu.memory_space<vmem>>) attributes {dimension_semantics = [#tpu.dimension_semantics<parallel>, #tpu.dimension_semantics<arbitrary>], iteration_bounds = array<i64: 2, 1>, scalar_prefetch = 0 : i64, scratch_operands = 2 : i64, tpu.core_type = #tpu.core_type<tc>, window_params = [{transform_indices = @transform_0, window_bounds = array<i64: 1, 8, 128>}, {transform_indices = @transform_1, window_bounds = array<i64: 1, 16, 128>}, {pipeline_mode = #tpu.pipeline_mode<synchronous>, transform_indices = @transform_2, window_bounds = array<i64: 1, 128>}, {pipeline_mode = #tpu.pipeline_mode<synchronous>, transform_indices = @transform_3, window_bounds = array<i64: 1, 128>}, {pipeline_mode = #tpu.pipeline_mode<synchronous>, transform_indices = @transform_4, window_bounds = array<i64: 128, 128>}, {pipeline_mode = #tpu.pipeline_mode<synchronous>, transform_indices = @transform_5, window_bounds = array<i64: 128, 128>}, {pipeline_mode = #tpu.pipeline_mode<synchronous>, transform_indices = @transform_6, window_bounds = array<i64: 128, 128>}, {pipeline_mode = #tpu.pipeline_mode<synchronous>, transform_indices = @transform_7, window_bounds = array<i64: 1, 128>}, {pipeline_mode = #tpu.pipeline_mode<synchronous>, transform_indices = @transform_8, window_bounds = array<i64: 1, 128>}, {pipeline_mode = #tpu.pipeline_mode<synchronous>, transform_indices = @transform_9, window_bounds = array<i64: 1, 128>}, {pipeline_mode = #tpu.pipeline_mode<synchronous>, transform_indices = @transform_10, window_bounds = array<i64: 128, 128>}, {pipeline_mode = #tpu.pipeline_mode<synchronous>, transform_indices = @transform_11, window_bounds = array<i64: 1, 128>}, {transform_indices = @transform_12, window_bounds = array<i64: 1, 8, 128>}]} {
    %c0 = arith.constant 0 : index
    %c0_0 = arith.constant 0 : index
    %c0_1 = arith.constant 0 : index
    %0 = vector.load %arg2[%c0, %c0_0, %c0_1] : memref<1x8x128xf32, #tpu.memory_space<vmem>>, vector<1x8x128xf32>
    %1 = vector.shape_cast %0 : vector<1x8x128xf32> to vector<8x128xf32>
    %c0_i32 = arith.constant 0 : i32
    %2 = arith.cmpi eq, %arg1, %c0_i32 : i32
    %3 = arith.extui %2 : i1 to i32
    %c0_i32_2 = arith.constant 0 : i32
    %4 = arith.cmpi ne, %3, %c0_i32_2 : i32
    scf.if %4 {
      %c0_33 = arith.constant 0 : index
      %c0_34 = arith.constant 0 : index
      %c0_35 = arith.constant 0 : index
      %71 = vector.load %arg3[%c0_33, %c0_34, %c0_35] : memref<1x16x128xbf16, #tpu.memory_space<vmem>>, vector<1x16x128xbf16>
      %72 = vector.shape_cast %71 : vector<1x16x128xbf16> to vector<16x128xbf16>
      %c0_36 = arith.constant 0 : index
      %c0_37 = arith.constant 0 : index
      %73 = vector.load %arg7[%c0_36, %c0_37] : memref<128x128xbf16, #tpu.memory_space<vmem>>, vector<128x128xbf16>
      %cst_38 = arith.constant dense<0.000000e+00> : vector<16x128xf32>
      %74 = tpu.matmul %72, %73, %cst_38 {dimension_numbers = #tpu.dot_dimension_numbers<[1], [0], [0], [1], [0, 0, 1, 1], [], []>} : vector<16x128xbf16>, vector<128x128xbf16>, vector<16x128xf32> -> vector<16x128xf32>
      %c0_39 = arith.constant 0 : index
      %c0_40 = arith.constant 0 : index
      %75 = vector.load %arg10[%c0_39, %c0_40] : memref<1x128xf32, #tpu.memory_space<vmem>>, vector<1x128xf32>
      %76 = vector.broadcast %75 : vector<1x128xf32> to vector<16x128xf32>
      %77 = arith.addf %74, %76 : vector<16x128xf32>
      %c0_41 = arith.constant 0 : index
      %c0_42 = arith.constant 0 : index
      %78 = vector.load %arg8[%c0_41, %c0_42] : memref<128x128xbf16, #tpu.memory_space<vmem>>, vector<128x128xbf16>
      %cst_43 = arith.constant dense<0.000000e+00> : vector<16x128xf32>
      %79 = tpu.matmul %72, %78, %cst_43 {dimension_numbers = #tpu.dot_dimension_numbers<[1], [0], [0], [1], [0, 0, 1, 1], [], []>} : vector<16x128xbf16>, vector<128x128xbf16>, vector<16x128xf32> -> vector<16x128xf32>
      %c0_44 = arith.constant 0 : index
      %c0_45 = arith.constant 0 : index
      %80 = vector.load %arg11[%c0_44, %c0_45] : memref<1x128xf32, #tpu.memory_space<vmem>>, vector<1x128xf32>
      %81 = vector.broadcast %80 : vector<1x128xf32> to vector<16x128xf32>
      %82 = arith.addf %79, %81 : vector<16x128xf32>
      %83 = arith.truncf %77 : vector<16x128xf32> to vector<16x128xbf16>
      %c0_46 = arith.constant 0 : index
      %c0_47 = arith.constant 0 : index
      %84 = vector.load %arg15[%c0_46, %c0_47] : memref<16x128xbf16, #tpu.memory_space<vmem>>, vector<16x128xbf16>
      tpu.vector_store %arg15[%c0_46, %c0_47], %83 {strides = array<i32>} : memref<16x128xbf16, #tpu.memory_space<vmem>>, vector<16x128xbf16>,
      %85 = arith.truncf %82 : vector<16x128xf32> to vector<16x128xbf16>
      %c0_48 = arith.constant 0 : index
      %c0_49 = arith.constant 0 : index
      %86 = vector.load %arg16[%c0_48, %c0_49] : memref<16x128xbf16, #tpu.memory_space<vmem>>, vector<16x128xbf16>
      tpu.vector_store %arg16[%c0_48, %c0_49], %85 {strides = array<i32>} : memref<16x128xbf16, #tpu.memory_space<vmem>>, vector<16x128xbf16>,
    } else {
    }
    %cst = arith.constant dense<0.000000e+00> : vector<8xf32>
    %5 = vector.multi_reduction <add>, %1, %cst [1] : vector<8x128xf32> to vector<8xf32>
    %6 = vector.shape_cast %5 : vector<8xf32> to vector<8x1xf32>
    %cst_3 = arith.constant 1.280000e+02 : f32
    %7 = vector.broadcast %cst_3 : f32 to vector<8x1xf32>
    %8 = arith.divf %6, %7 : vector<8x1xf32>
    %9 = vector.broadcast %8 : vector<8x1xf32> to vector<8x128xf32>
    %10 = arith.subf %1, %9 : vector<8x128xf32>
    %11 = arith.mulf %10, %10 : vector<8x128xf32>
    %cst_4 = arith.constant dense<0.000000e+00> : vector<8xf32>
    %12 = vector.multi_reduction <add>, %11, %cst_4 [1] : vector<8x128xf32> to vector<8xf32>
    %13 = vector.shape_cast %12 : vector<8xf32> to vector<8x1xf32>
    %cst_5 = arith.constant 1.280000e+02 : f32
    %14 = vector.broadcast %cst_5 : f32 to vector<8x1xf32>
    %15 = arith.divf %13, %14 : vector<8x1xf32>
    %16 = vector.broadcast %8 : vector<8x1xf32> to vector<8x128xf32>
    %17 = arith.subf %1, %16 : vector<8x128xf32>
    %cst_6 = arith.constant 9.99999974E-6 : f32
    %18 = vector.broadcast %cst_6 : f32 to vector<8x1xf32>
    %19 = arith.addf %15, %18 : vector<8x1xf32>
    %20 = math.rsqrt %19 : vector<8x1xf32>
    %21 = vector.broadcast %20 : vector<8x1xf32> to vector<8x128xf32>
    %22 = arith.mulf %17, %21 : vector<8x128xf32>
    %c0_7 = arith.constant 0 : index
    %c0_8 = arith.constant 0 : index
    %23 = vector.load %arg4[%c0_7, %c0_8] : memref<1x128xf32, #tpu.memory_space<vmem>>, vector<1x128xf32>
    %24 = vector.broadcast %23 : vector<1x128xf32> to vector<8x128xf32>
    %25 = arith.mulf %22, %24 : vector<8x128xf32>
    %c0_9 = arith.constant 0 : index
    %c0_10 = arith.constant 0 : index
    %26 = vector.load %arg5[%c0_9, %c0_10] : memref<1x128xf32, #tpu.memory_space<vmem>>, vector<1x128xf32>
    %27 = vector.broadcast %26 : vector<1x128xf32> to vector<8x128xf32>
    %28 = arith.addf %25, %27 : vector<8x128xf32>
    %29 = arith.truncf %28 : vector<8x128xf32> to vector<8x128xbf16>
    %c0_11 = arith.constant 0 : index
    %c0_12 = arith.constant 0 : index
    %30 = vector.load %arg6[%c0_11, %c0_12] : memref<128x128xbf16, #tpu.memory_space<vmem>>, vector<128x128xbf16>
    %cst_13 = arith.constant dense<0.000000e+00> : vector<8x128xf32>
    %31 = tpu.matmul %29, %30, %cst_13 {dimension_numbers = #tpu.dot_dimension_numbers<[1], [0], [0], [1], [0, 0, 1, 1], [], []>} : vector<8x128xbf16>, vector<128x128xbf16>, vector<8x128xf32> -> vector<8x128xf32>
    %c0_14 = arith.constant 0 : index
    %c0_15 = arith.constant 0 : index
    %32 = vector.load %arg9[%c0_14, %c0_15] : memref<1x128xf32, #tpu.memory_space<vmem>>, vector<1x128xf32>
    %33 = vector.broadcast %32 : vector<1x128xf32> to vector<8x128xf32>
    %34 = arith.addf %31, %33 : vector<8x128xf32>
    %cst_16 = arith.constant 2.500000e-01 : f32
    %35 = vector.broadcast %cst_16 : f32 to vector<8x128xf32>
    %36 = arith.mulf %34, %35 : vector<8x128xf32>
    %37 = arith.truncf %36 : vector<8x128xf32> to vector<8x128xbf16>
    %38 = vector.shape_cast %37 : vector<8x128xbf16> to vector<8x8x16xbf16>
    %39 = tpu.transpose %38, [1, 0, 2] : vector<8x8x16xbf16> -> vector<8x8x16xbf16>
    %c0_17 = arith.constant 0 : index
    %c0_18 = arith.constant 0 : index
    %40 = vector.load %arg15[%c0_17, %c0_18] : memref<16x128xbf16, #tpu.memory_space<vmem>>, vector<16x128xbf16>
    %41 = vector.shape_cast %40 : vector<16x128xbf16> to vector<16x8x16xbf16>
    %42 = tpu.transpose %41, [1, 0, 2] : vector<16x8x16xbf16> -> vector<8x16x16xbf16>
    %c0_19 = arith.constant 0 : index
    %c0_20 = arith.constant 0 : index
    %43 = vector.load %arg16[%c0_19, %c0_20] : memref<16x128xbf16, #tpu.memory_space<vmem>>, vector<16x128xbf16>
    %44 = vector.shape_cast %43 : vector<16x128xbf16> to vector<16x8x16xbf16>
    %45 = tpu.transpose %44, [1, 0, 2] : vector<16x8x16xbf16> -> vector<8x16x16xbf16>
    "tpu.trace_start"() <{level = 10 : i32, message = "hqd,hkd->hqk"}> : () -> ()
    %cst_21 = arith.constant dense<0.000000e+00> : vector<8x8x16xf32>
    %46 = tpu.matmul %39, %42, %cst_21 {dimension_numbers = #tpu.dot_dimension_numbers<[2], [2], [1], [1], [0, 0, 0, 1, 1, 1], [0], [0]>} : vector<8x8x16xbf16>, vector<8x16x16xbf16>, vector<8x8x16xf32> -> vector<8x8x16xf32>
    "tpu.trace_stop"() : () -> ()
    %cst_22 = arith.constant dense<0xFF800000> : vector<8x8xf32>
    %47 = vector.multi_reduction <maximumf>, %46, %cst_22 [2] : vector<8x8x16xf32> to vector<8x8xf32>
    %48 = vector.shape_cast %47 : vector<8x8xf32> to vector<8x8x1xf32>
    %49 = vector.broadcast %48 : vector<8x8x1xf32> to vector<8x8x16xf32>
    %50 = arith.subf %46, %49 : vector<8x8x16xf32>
    %51 = math.exp %50 : vector<8x8x16xf32>
    %cst_23 = arith.constant dense<0.000000e+00> : vector<8x8xf32>
    %52 = vector.multi_reduction <add>, %51, %cst_23 [2] : vector<8x8x16xf32> to vector<8x8xf32>
    %53 = vector.shape_cast %52 : vector<8x8xf32> to vector<8x8x1xf32>
    %54 = tpu.reciprocal %53 {approx = true} : vector<8x8x1xf32> -> vector<8x8x1xf32>
    %55 = vector.broadcast %54 : vector<8x8x1xf32> to vector<8x8x16xf32>
    %56 = arith.mulf %51, %55 : vector<8x8x16xf32>
    %57 = arith.truncf %56 : vector<8x8x16xf32> to vector<8x8x16xbf16>
    "tpu.trace_start"() <{level = 10 : i32, message = "hqk,hkd->hqd"}> : () -> ()
    %cst_24 = arith.constant dense<0.000000e+00> : vector<8x8x16xf32>
    %58 = tpu.matmul %57, %45, %cst_24 {dimension_numbers = #tpu.dot_dimension_numbers<[2], [1], [1], [2], [0, 0, 0, 1, 1, 2], [0], [0]>} : vector<8x8x16xbf16>, vector<8x16x16xbf16>, vector<8x8x16xf32> -> vector<8x8x16xf32>
    "tpu.trace_stop"() : () -> ()
    %59 = tpu.transpose %58, [1, 0, 2] : vector<8x8x16xf32> -> vector<8x8x16xf32>
    %60 = vector.shape_cast %59 : vector<8x8x16xf32> to vector<8x128xf32>
    %61 = arith.truncf %60 : vector<8x128xf32> to vector<8x128xbf16>
    %c0_25 = arith.constant 0 : index
    %c0_26 = arith.constant 0 : index
    %62 = vector.load %arg12[%c0_25, %c0_26] : memref<128x128xbf16, #tpu.memory_space<vmem>>, vector<128x128xbf16>
    %cst_27 = arith.constant dense<0.000000e+00> : vector<8x128xf32>
    %63 = tpu.matmul %61, %62, %cst_27 {dimension_numbers = #tpu.dot_dimension_numbers<[1], [0], [0], [1], [0, 0, 1, 1], [], []>} : vector<8x128xbf16>, vector<128x128xbf16>, vector<8x128xf32> -> vector<8x128xf32>
    %c0_28 = arith.constant 0 : index
    %c0_29 = arith.constant 0 : index
    %64 = vector.load %arg13[%c0_28, %c0_29] : memref<1x128xf32, #tpu.memory_space<vmem>>, vector<1x128xf32>
    %65 = vector.broadcast %64 : vector<1x128xf32> to vector<8x128xf32>
    %66 = arith.addf %63, %65 : vector<8x128xf32>
    %67 = arith.addf %1, %66 : vector<8x128xf32>
    %c0_30 = arith.constant 0 : index
    %c0_31 = arith.constant 0 : index
    %c0_32 = arith.constant 0 : index
    %68 = vector.load %arg14[%c0_30, %c0_31, %c0_32] : memref<1x8x128xf32, #tpu.memory_space<vmem>>, vector<1x8x128xf32>
    %69 = vector.shape_cast %68 : vector<1x8x128xf32> to vector<8x128xf32>
    %70 = vector.shape_cast %67 : vector<8x128xf32> to vector<1x8x128xf32>
    tpu.vector_store %arg14[%c0_30, %c0_31, %c0_32], %70 {strides = array<i32>} : memref<1x8x128xf32, #tpu.memory_space<vmem>>, vector<1x8x128xf32>,
    return
  }
  func.func @transform_0(%arg0: i32, %arg1: i32) -> (i32, i32, i32) {
    %c0_i32 = arith.constant 0 : i32
    %c0_i32_0 = arith.constant 0 : i32
    return %arg0, %arg1, %c0_i32 : i32, i32, i32
  }
  func.func @transform_1(%arg0: i32, %arg1: i32) -> (i32, i32, i32) {
    %c0_i32 = arith.constant 0 : i32
    %c0_i32_0 = arith.constant 0 : i32
    %c0_i32_1 = arith.constant 0 : i32
    return %arg0, %c0_i32, %c0_i32_0 : i32, i32, i32
  }
  func.func @transform_2(%arg0: i32, %arg1: i32) -> (i32, i32) {
    %c0_i32 = arith.constant 0 : i32
    %c0_i32_0 = arith.constant 0 : i32
    %c0_i32_1 = arith.constant 0 : i32
    return %c0_i32, %c0_i32_0 : i32, i32
  }
  func.func @transform_3(%arg0: i32, %arg1: i32) -> (i32, i32) {
    %c0_i32 = arith.constant 0 : i32
    %c0_i32_0 = arith.constant 0 : i32
    %c0_i32_1 = arith.constant 0 : i32
    return %c0_i32, %c0_i32_0 : i32, i32
  }
  func.func @transform_4(%arg0: i32, %arg1: i32) -> (i32, i32) {
    %c0_i32 = arith.constant 0 : i32
    %c0_i32_0 = arith.constant 0 : i32
    %c0_i32_1 = arith.constant 0 : i32
    return %c0_i32, %c0_i32_0 : i32, i32
  }
  func.func @transform_5(%arg0: i32, %arg1: i32) -> (i32, i32) {
    %c0_i32 = arith.constant 0 : i32
    %c0_i32_0 = arith.constant 0 : i32
    %c0_i32_1 = arith.constant 0 : i32
    return %c0_i32, %c0_i32_0 : i32, i32
  }
  func.func @transform_6(%arg0: i32, %arg1: i32) -> (i32, i32) {
    %c0_i32 = arith.constant 0 : i32
    %c0_i32_0 = arith.constant 0 : i32
    %c0_i32_1 = arith.constant 0 : i32
    return %c0_i32, %c0_i32_0 : i32, i32
  }
  func.func @transform_7(%arg0: i32, %arg1: i32) -> (i32, i32) {
    %c0_i32 = arith.constant 0 : i32
    %c0_i32_0 = arith.constant 0 : i32
    %c0_i32_1 = arith.constant 0 : i32
    return %c0_i32, %c0_i32_0 : i32, i32
  }
  func.func @transform_8(%arg0: i32, %arg1: i32) -> (i32, i32) {
    %c0_i32 = arith.constant 0 : i32
    %c0_i32_0 = arith.constant 0 : i32
    %c0_i32_1 = arith.constant 0 : i32
    return %c0_i32, %c0_i32_0 : i32, i32
  }
  func.func @transform_9(%arg0: i32, %arg1: i32) -> (i32, i32) {
    %c0_i32 = arith.constant 0 : i32
    %c0_i32_0 = arith.constant 0 : i32
    %c0_i32_1 = arith.constant 0 : i32
    return %c0_i32, %c0_i32_0 : i32, i32
  }
  func.func @transform_10(%arg0: i32, %arg1: i32) -> (i32, i32) {
    %c0_i32 = arith.constant 0 : i32
    %c0_i32_0 = arith.constant 0 : i32
    %c0_i32_1 = arith.constant 0 : i32
    return %c0_i32, %c0_i32_0 : i32, i32
  }
  func.func @transform_11(%arg0: i32, %arg1: i32) -> (i32, i32) {
    %c0_i32 = arith.constant 0 : i32
    %c0_i32_0 = arith.constant 0 : i32
    %c0_i32_1 = arith.constant 0 : i32
    return %c0_i32, %c0_i32_0 : i32, i32
  }
  func.func @transform_12(%arg0: i32, %arg1: i32) -> (i32, i32, i32) {
    %c0_i32 = arith.constant 0 : i32
    %c0_i32_0 = arith.constant 0 : i32
    return %arg0, %arg1, %c0_i32 : i32, i32, i32
  }
}

</mosaic_0001>

<bundles_post_ra>
// kernel: tpu_custom_call.1
= control target key start
LH: loop header
LB: loop body
LE: loop exit
PB: predicated region body
PF: predicated region fallthrough
CT: control target
= control target key end

     0   :  { %s4909_s0 = inlined_call_operand.hbm [shape: f32[2,8,128], index: 0, kind: input, shape index: {}]   ;;  %s4910_s1 = inlined_call_operand.hbm [shape: bf16[2,16,128], index: 1, kind: input, shape index: {}]   ;;  %s4911_s2 = inlined_call_operand.vmem [shape: f32[1,128], index: 2, kind: input, shape index: {}]   ;;  %s4912_s3 = inlined_call_operand.vmem [shape: f32[1,128], index: 3, kind: input, shape index: {}]   ;;  %s4913_s4 = inlined_call_operand.hbm [shape: bf16[128,128], index: 4, kind: input, shape index: {}]   ;;  %s4914_s5 = inlined_call_operand.hbm [shape: bf16[128,128], index: 5, kind: input, shape index: {}]   ;;  %s4915_s6 = inlined_call_operand.hbm [shape: bf16[128,128], index: 6, kind: input, shape index: {}]   ;;  %s4916_s7 = inlined_call_operand.vmem [shape: f32[1,128], index: 7, kind: input, shape index: {}]   ;;  %s4917_s8 = inlined_call_operand.vmem [shape: f32[1,128], index: 8, kind: input, shape index: {}]   ;;  %s4918_s9 = inlined_call_operand.vmem [shape: f32[1,128], index: 9, kind: input, shape index: {}]   ;;  %s4919_s10 = inlined_call_operand.hbm [shape: bf16[128,128], index: 10, kind: input, shape index: {}]   ;;  %s4920_s11 = inlined_call_operand.vmem [shape: f32[1,128], index: 11, kind: input, shape index: {}]   ;;  %s4921_s12 = inlined_call_operand.hbm [shape: f32[2,8,128], index: 12, kind: output, shape index: {}]  }
   0x1   :  { %4929 = sst [smem:[#allocation24_spill]] %s4912_s3 }
   0x2   :  { %4930 = sst [smem:[#allocation25_spill]] %s4913_s4 }
   0x3   :  { %4931 = sst [smem:[#allocation26_spill]] %s4914_s5 }
   0x4   :  { %4932 = sst [smem:[#allocation27_spill]] %s4915_s6 }
   0x5   :  { %4933 = sst [smem:[#allocation28_spill]] %s4916_s7 }
   0x6   :  { %4934 = sst [smem:[#allocation29_spill]] %s4918_s9 }
   0x7   :  { %4935 = sst [smem:[#allocation30_spill]] %s4919_s10 }
   0x8   :  { %4936 = sst [smem:[#allocation31_spill]] %s4920_s11 }
   0x9   :  { %4937 = sst [smem:[#allocation32_spill]] %s4921_s12 }
   0xa   :  { %17 = vsyncpa [#allocation5], 0 }
   0xb   :  { %19 = vsyncpa [#allocation5 + $0x1], 0 }
   0xc   :  { %20 = vsyncpa [#allocation8], 0 }
   0xd   :  { %22 = vsyncpa [#allocation8 + $0x1], 0 }
   0xe   :  { %23 = vsyncpa [#allocation11], 0 }
   0xf   :  { %24 = vsyncpa [#allocation14], 0 }
  0x10   :  { %25 = vsyncpa [#allocation6], 0 }
  0x11   :  { %27 = vsyncpa [#allocation6 + $0x1], 0  ;;  %s4119_s21 = smov 0   ;;  %s4121_s22 = smov 0  }
  0x12   :  { %s4123_s23 = smov 0   ;;  %s4125_s24 = smov 0  }
  0x13   :  { %s4127_s25 = smov 0   ;;  %s4129_s26 = smov 0  }
  0x14 LB: > { %4938 = sst [smem:[#allocation22_spill]] %s4023_s24  ;;  %s4150_s27 = sadd.s32 4294967295, %s4031_s26   ;;  %s4031_s26 = sphi %s4129_s26, %s33_s26   ;;  %s4027_s25 = sphi %s4127_s25, %s4976_s25   ;;  %s4023_s24 = sphi %s4125_s24, %s4975_s24   ;;  %s4019_s23 = sphi %s4123_s23, %s4974_s23   ;;  %s4015_s22 = sphi %s4121_s22, %s4973_s22   ;;  %s4011_s21 = sphi %s4119_s21, %s4972_s21  }
  0x15   : > { %p3232_p0 = scmp.ge.s32.totalorder %s4031_s26, 1  ;;  %p4923_p1 = scmp.eq.s32.totalorder %s4150_s27, 0 }
  0x16   : > { %p342_p2 = scmp.lt.s32.totalorder %s4031_s26, 3  ;;  %s4033_s29 = smov [#allocation9]  }
  0x17   : > { %s360_s30 = sshll.u32 %s4033_s29, 4  ;;  %s4034_s14 = smov [#allocation10]   ;;  %s4159_s30 = int_to_ptr.vmem [resolvable:$true] %s360_s30 }
  0x18   : > { %p4155_p3 = pnand %p3232_p0, %p342_p2  ;;  %s373_s15 = sshll.u32 %s4034_s14, 4  ;;  %s4170_s15 = int_to_ptr.vmem [resolvable:$true] %s373_s15 }
  0x19   : > { %s4035_s16 = smov [#allocation12]   ;;  %s4941_s4 = sld [smem:[#allocation25_spill]] }
  0x1a   : > { %s4939_s28 = scalar_select %p4155_p3, 1, 0 }
  0x1b   : > { %p3593_p4 = pneg %p4155_p3  ;;  %s4172_s17 = sshll.u32 %s4035_s16, 4  ;;  %s387_s17 = int_to_ptr.vmem [resolvable:$true] %s4172_s17 }
  0x1d   : > { %p4166_p6 = pnand %p3593_p4, %p4923_p1 }
  0x1f   : > { %s3761_s20 = scalar_lea.hbm %s4941_s4, 1024  ;;  %p4182_p8 = pneg %p4166_p6 }
  0x20   : > { %p3762_p7 = scmp.ne.s32.totalorder %s4941_s4, %s3761_s20  ;;  %p3768_p11 = scmp.lt.u32.totalorder %s3761_s20, %s4941_s4 }
  0x22   : > { %p3764_p9 = pnand %p4182_p8, %p3762_p7 }
  0x24   : > { %p3765_p10 = pneg %p3764_p9 }
  0x26   : > { %p3770_p12 = pnand %p3768_p11, %p3765_p10 }
  0x28   : > { %3773 = shalt.err (!%p3770_p12)
}
  0x29   : > { %s3774_s12 = scalar_lea.vmem %s4159_s30, 1024  ;;  %p3782_p4 = scmp.lt.s32.totalorder %s4159_s30, %s4159_s30 }
  0x2a   : > { %p3775_p13 = scmp.ne.s32.totalorder %s4159_s30, %s3774_s12  ;;  %p3783_p5 = scmp.lt.s32.totalorder %s3774_s12, %s3774_s12 }
  0x2c   : > { %p3777_p0 = pnand %p3775_p13, %p4182_p8  ;;  %p3784_p7 = por %p3783_p5, %p3782_p4 }
  0x2e   : > { %p3778_p2 = pneg %p3777_p0 }
  0x30   : > { %p3785_p9 = pnand %p3784_p7, %p3778_p2 }
  0x32   : > { %3788 = shalt.err (!%p3785_p9)
}
  0x33   : > { %s4925_s18 = smov 64   ;;  %s4926_s19 = smov 4  }
  0x34   : > { %3596 = dma.hbm_to_vmem [thread:$0]  (!%p4166_p6), %s4941_s4, 1024, %s4159_s30, [#allocation8], %s4925_s18, %s4925_s18, %s4926_s19  }
  0x35   : > { %s4943_s5 = sld [smem:[#allocation26_spill]] }
  0x3b   : > { %s3789_s12 = scalar_lea.hbm %s4943_s5, 1024 }
  0x3c   : > { %p3790_p5 = scmp.ne.s32.totalorder %s4943_s5, %s3789_s12  ;;  %p3796_p12 = scmp.lt.u32.totalorder %s3789_s12, %s4943_s5 }
  0x3e   : > { %p3792_p10 = pnand %p3790_p5, %p4182_p8 }
  0x40   : > { %p3793_p11 = pneg %p3792_p10 }
  0x42   : > { %p3798_p13 = pnand %p3796_p12, %p3793_p11 }
  0x44   : > { %3801 = shalt.err (!%p3798_p13)
}
  0x45   : > { %s3802_s30 = scalar_lea.vmem %s4170_s15, 1024  ;;  %p3810_p7 = scmp.lt.s32.totalorder %s4170_s15, %s4170_s15 }
  0x46   : > { %p3803_p0 = scmp.ne.s32.totalorder %s4170_s15, %s3802_s30  ;;  %p3811_p9 = scmp.lt.s32.totalorder %s3802_s30, %s3802_s30 }
  0x48   : > { %p3805_p2 = pnand %p3803_p0, %p4182_p8  ;;  %p3812_p5 = por %p3811_p9, %p3810_p7 }
  0x4a   : > { %p3806_p4 = pneg %p3805_p2 }
  0x4c   : > { %p3813_p10 = pnand %p3812_p5, %p3806_p4 }
  0x4e   : > { %3816 = shalt.err (!%p3813_p10)
}
  0x4f   : > { %3599 = dma.hbm_to_vmem [thread:$0]  (!%p4166_p6), %s4943_s5, 1024, %s4170_s15, [#allocation11], %s4925_s18, %s4925_s18, %s4926_s19  }
  0x50   : > { %s4944_s6 = sld [smem:[#allocation27_spill]] }
  0x56   : > { %s3817_s20 = scalar_lea.hbm %s4944_s6, 1024 }
  0x57   : > { %p3818_p11 = scmp.ne.s32.totalorder %s4944_s6, %s3817_s20  ;;  %p3824_p0 = scmp.lt.u32.totalorder %s3817_s20, %s4944_s6 }
  0x59   : > { %p3820_p12 = pnand %p3818_p11, %p4182_p8 }
  0x5b   : > { %p3821_p13 = pneg %p3820_p12 }
  0x5d   : > { %p3826_p2 = pnand %p3824_p0, %p3821_p13 }
  0x5f   : > { %3829 = shalt.err (!%p3826_p2)
}
  0x60   : > { %s3830_s30 = scalar_lea.vmem %s387_s17, 1024  ;;  %p3838_p5 = scmp.lt.s32.totalorder %s387_s17, %s387_s17 }
  0x61   : > { %p3831_p4 = scmp.ne.s32.totalorder %s387_s17, %s3830_s30  ;;  %p3839_p10 = scmp.lt.s32.totalorder %s3830_s30, %s3830_s30 }
  0x63   : > { %p3833_p7 = pnand %p3831_p4, %p4182_p8  ;;  %p3840_p1 = por %p3839_p10, %p3838_p5 }
  0x65   : > { %p3834_p9 = pneg %p3833_p7 }
  0x67   : > { %p3841_p3 = pnand %p3840_p1, %p3834_p9 }
  0x69   : > { %3844 = shalt.err (!%p3841_p3)
}
  0x6a   : > { %3602 = dma.hbm_to_vmem [thread:$0]  (!%p4166_p6), %s4944_s6, 1024, %s387_s17, [#allocation11], %s4925_s18, %s4925_s18, %s4926_s19  }
  0x6b   : > { %s4038_s7 = smov [#allocation13]   ;;  %s4945_s10 = sld [smem:[#allocation30_spill]] }
  0x6c   : > { %s408_s9 = sshll.u32 %s4038_s7, 4  ;;  %s409_s9 = int_to_ptr.vmem [resolvable:$true] %s408_s9 }
  0x71   : > { %s3845_s29 = scalar_lea.hbm %s4945_s10, 1024 }
  0x72   : > { %p3846_p1 = scmp.ne.s32.totalorder %s4945_s10, %s3845_s29  ;;  %p3852_p12 = scmp.lt.u32.totalorder %s3845_s29, %s4945_s10 }
  0x74   : > { %p3848_p3 = pnand %p3846_p1, %p4182_p8 }
  0x76   : > { %p3849_p11 = pneg %p3848_p3 }
  0x78   : > { %p3854_p13 = pnand %p3852_p12, %p3849_p11 }
  0x7a   : > { %3857 = shalt.err (!%p3854_p13)
}
  0x7b   : > { %s3858_s17 = scalar_lea.vmem %s409_s9, 1024  ;;  %p3866_p7 = scmp.lt.s32.totalorder %s409_s9, %s409_s9 }
  0x7c   : > { %p3859_p0 = scmp.ne.s32.totalorder %s409_s9, %s3858_s17  ;;  %p3867_p9 = scmp.lt.s32.totalorder %s3858_s17, %s3858_s17 }
  0x7e   : > { %p3861_p2 = pnand %p3859_p0, %p4182_p8  ;;  %p3868_p5 = por %p3867_p9, %p3866_p7 }
  0x80   : > { %p3862_p4 = pneg %p3861_p2 }
  0x82   : > { %p3869_p10 = pnand %p3868_p5, %p3862_p4 }
  0x84   : > { %3872 = shalt.err (!%p3869_p10)
}
  0x85   : > { %3605 = dma.hbm_to_vmem [thread:$0]  (!%p4166_p6), %s4945_s10, 1024, %s409_s9, [#allocation14], %s4925_s18, %s4925_s18, %s4926_s19  }
  0x86   : > { %s3231_s11 = sadd.s32 4294967294, %s4031_s26   ;;  %s45_s13 = sadd.s32 1, %s4027_s25 }
  0x87   : > { %p47_p8 = scmp.ge.s32.totalorder %s45_s13, 2  ;;  %s54_s7 = sadd.s32 1, %s4019_s23 }
  0x88   : > { %p61_p1 = scmp.ne.s32.totalorder %s4019_s23, %s4015_s22  ;;  %p62_p3 = scmp.eq.s32.totalorder %s4031_s26, 0 }
  0x89   : > { %s4978_s13 = smov (%p47_p8, %s45_s13), 0  ;;  %p67_p12 = scmp.ne.s32.totalorder %s4015_s22, %s4011_s21 }
  0x8a   : > { %4946 = sst [smem:[#allocation23_spill]] %s4978_s13  ;;  %p4283_p11 = por %p62_p3, %p61_p1 }
  0x8b   : > { %s49_s9 = ssub.s32 %s4027_s25, %s4978_s13  ;;  %p329_p6 = scmp.eq.s32.totalorder %s4150_s27, 1 }
  0x8c   : > { %p52_p13 = scmp.eq.s32.totalorder %s49_s9, 0  ;;  %p4948_p0 = scmp.eq.s32.totalorder %s4150_s27, 0 }
  0x8d   : > { %p4298_p4 = por %p329_p6, %p61_p1  ;;  %p335_p7 = scmp.eq.s32.totalorder %s3231_s11, 1 }
  0x8e   : > { %p4294_p2 = por %p4948_p0, %p67_p12  ;;  %p3621_p5 = scmp.lt.s32.totalorder %s4031_s26, 2 }
  0x8f   : > { %s4950_s29 = scalar_select %p4298_p4, 1, 0 }
  0x90   : > { %s4303_s14 = scalar_select %p52_p13, %s4019_s23, %s54_s7  }
  0x91   : > { %p4305_p9 = por %p335_p7, %p67_p12  ;;  %s425_s12 = sand.u32 1, %s4019_s23  }
  0x92   : > { %s3239_s30 = sshll.u32 %s4027_s25, 7  ;;  %s4312_s17 = sshll.u32 %s425_s12, 3 }
  0x93   : > { %s4951_s16 = scalar_select %p4305_p9, 1, 0 }
  0x94   : > { %s4317_s9 = scalar_lea.hbm %s4909_s0, %s3239_s30  ;;  %s429_s11 = scalar_lea.vmem [#allocation4], %s4312_s17 }
  0x95   : > { %s437_s7 = sshll.u32 %s429_s11, 4  ;;  %p4322_p10 = pnand %p3621_p5, %p4283_p11  ;;  %s4326_s7 = int_to_ptr.vmem [resolvable:$true] %s437_s7 }
  0x96   : > { %s4331_s3 = scalar_lea.hbm %s4910_s1, %s3239_s30  ;;  %s426_s4 = scalar_lea.sflag [#allocation5], %s425_s12 }
  0x97   : > { %s3873_s5 = scalar_lea.hbm %s4317_s9, 128  ;;  %p3875_p1 = pneg %p4322_p10 }
  0x98   : > { %p3874_p8 = scmp.ne.s32.totalorder %s4317_s9, %s3873_s5  ;;  %s3878_s6 = scalar_lea.hbm %s4909_s0, 256 }
  0x99   : > { %p3879_p12 = scmp.lt.u32.totalorder %s4317_s9, %s4909_s0  ;;  %p3880_p6 = scmp.lt.u32.totalorder %s3878_s6, %s3873_s5 }
  0x9a   : > { %p3876_p3 = pnand %p3875_p1, %p3874_p8  ;;  %p3882_p0 = scmp.lt.u32.totalorder %s3873_s5, %s4317_s9 }
  0x9b   : > { %p3881_p13 = por %p3880_p6, %p3879_p12 }
  0x9c   : > { %p3877_p11 = pneg %p3876_p3 }
  0x9d   : > { %p3883_p7 = por %p3882_p0, %p3881_p13 }
  0x9f   : > { %p3884_p5 = pnand %p3883_p7, %p3877_p11 }
  0xa1   : > { %3887 = shalt.err (!%p3884_p5)
}
  0xa2   : > { %s3888_s19 = scalar_lea.vmem %s4326_s7, 128  ;;  %s4039_s12 = smov [#allocation4]  }
  0xa3   : > { %p3889_p8 = scmp.ne.s32.totalorder %s4326_s7, %s3888_s19  ;;  %s3893_s30 = sshll.u32 %s4039_s12, 4  ;;  %s3894_s30 = int_to_ptr.vmem [resolvable:$false] %s3893_s30 }
  0xa4   : > { %s3895_s10 = scalar_lea.vmem %s3894_s30, 256  ;;  %p3896_p4 = scmp.lt.s32.totalorder %s4326_s7, %s3894_s30 }
  0xa5   : > { %p3891_p3 = pnand %p3889_p8, %p3875_p1  ;;  %p3897_p12 = scmp.lt.s32.totalorder %s3895_s10, %s3888_s19 }
  0xa7   : > { %p3892_p9 = pneg %p3891_p3  ;;  %p3898_p6 = por %p3897_p12, %p3896_p4 }
  0xa9   : > { %p3899_p13 = pnand %p3898_p6, %p3892_p9 }
  0xab   : > { %3902 = shalt.err (!%p3899_p13)
}
  0xac   : > { %3609 = dma.hbm_to_vmem [thread:$0]  (!%p4322_p10), %s4317_s9, 128, %s4326_s7, %s426_s4  }
  0xad   : > { %s448_s5 = scalar_lea.vmem [#allocation7], %s4312_s17  ;;  %s444_s13 = sand.u32 1, %s4031_s26  }
  0xae   : > { %s455_s6 = sshll.u32 %s448_s5, 4  ;;  %s4362_s15 = scalar_lea.sflag [#allocation8], %s444_s13  ;;  %s4360_s6 = int_to_ptr.vmem [resolvable:$true] %s455_s6 }
  0xaf   : > { %s3903_s24 = scalar_lea.hbm %s4331_s3, 128  ;;  %s3908_s12 = scalar_lea.hbm %s4910_s1, 256 }
  0xb0   : > { %p3904_p4 = scmp.ne.s32.totalorder %s4331_s3, %s3903_s24  ;;  %p3909_p0 = scmp.lt.u32.totalorder %s4331_s3, %s4910_s1 }
  0xb1   : > { %p3910_p7 = scmp.lt.u32.totalorder %s3908_s12, %s3903_s24  ;;  %p3912_p8 = scmp.lt.u32.totalorder %s3903_s24, %s4331_s3 }
  0xb2   : > { %p3906_p9 = pnand %p3904_p4, %p3875_p1 }
  0xb3   : > { %p3911_p5 = por %p3910_p7, %p3909_p0 }
  0xb4   : > { %p3907_p11 = pneg %p3906_p9 }
  0xb5   : > { %p3913_p3 = por %p3912_p8, %p3911_p5 }
  0xb7   : > { %p3914_p12 = pnand %p3913_p3, %p3907_p11 }
  0xb9   : > { %3917 = shalt.err (!%p3914_p12)
}
  0xba   : > { %s3918_s4 = scalar_lea.vmem %s4360_s6, 128  ;;  %s4040_s17 = smov [#allocation7]  }
  0xbb   : > { %p3919_p6 = scmp.ne.s32.totalorder %s4360_s6, %s3918_s4  ;;  %s3923_s9 = sshll.u32 %s4040_s17, 4  ;;  %s3924_s9 = int_to_ptr.vmem [resolvable:$false] %s3923_s9 }
  0xbc   : > { %s3925_s7 = scalar_lea.vmem %s3924_s9, 256  ;;  %p3926_p9 = scmp.lt.s32.totalorder %s4360_s6, %s3924_s9 }
  0xbd   : > { %p3921_p13 = pnand %p3919_p6, %p3875_p1  ;;  %p3927_p0 = scmp.lt.s32.totalorder %s3925_s7, %s3918_s4 }
  0xbf   : > { %p3922_p4 = pneg %p3921_p13  ;;  %p3928_p7 = por %p3927_p0, %p3926_p9 }
  0xc1   : > { %p3929_p5 = pnand %p3928_p7, %p3922_p4 }
  0xc3   : > { %3932 = shalt.err (!%p3929_p5)
}
  0xc4   : > { %s4953_s5 = smov 4   ;;  %s4954_s13 = smov 64  }
  0xc5   : > { %3612 = dma.hbm_to_vmem [thread:$0]  (!%p4322_p10), %s4331_s3, 128, %s4360_s6, %s4362_s15, %s4954_s13, %s4954_s13, %s4953_s5  }
  0xc6   : > { %p4955_p1 = scmp.ne.s32.totalorder %s4939_s28, 0 }
  0xc7   : > { %s4394_s24 = sand.u32 (!%p4955_p1), 1, %s4015_s22  }
  0xc8   : > { %467 = sbr.rel (%p4955_p1) target bundleno = 2073 (0x819), region = 68  ;;  %s4397_s11 = sshll.u32 (!%p4955_p1), %s4394_s24, 3 }
  0xc9   : > { %s470_s18 = scalar_lea.sflag (!%p4955_p1), [#allocation5], %s4394_s24  ;;  %s473_s19 = scalar_lea.vmem (!%p4955_p1), [#allocation4], %s4397_s11 }
  0xcf   : > { %3986 = dma.done.wait (%p4294_p2), %s470_s18, 128  }
  0xd0   : > { %3988 = vsyncadd (%p4294_p2), %s470_s18, 4294967168  ;;  %s478_s28 = sand.u32 1, %s4150_s27   ;;  %s482_s6 = scalar_lea.vmem [#allocation7], %s4397_s11 }
  0xd1   : > { %s479_s3 = scalar_lea.sflag [#allocation8], %s478_s28 }
  0xd2   : > { %3990 = dma.done.wait (%p4294_p2), %s479_s3, 128  }
  0xd3   : > { %3992 = vsyncadd (%p4294_p2), %s479_s3, 4294967168  ;;  %p4956_p10 = scmp.eq.s32.totalorder %s4150_s27, 0 }
  0xd5   : > { %3994 = dma.done.wait (%p4956_p10), [#allocation8], 1024   ;;  %p4957_p11 = pmov %p4956_p10 }
  0xd6   : > { %p4958_p8 = pmov %p4956_p10 }
  0xd7   : > { %3996 = vsyncadd (%p4957_p11), [#allocation8], 4294966272 }
  0xd8   : > { %3998 = dma.done.wait (%p4958_p8), [#allocation11], 2048   ;;  %p4959_p3 = pmov %p4958_p8 }
  0xda   : > { %4000 = vsyncadd (%p4959_p3), [#allocation11], 4294965248  ;;  %p4960_p12 = pmov %p4959_p3 }
  0xdb   : > { %p4961_p6 = pmov %p4959_p3 }
  0xdc   : > { %4002 = dma.done.wait (%p4960_p12), [#allocation14], 1024  }
  0xdd   : > { %4004 = vsyncadd (%p4961_p6), [#allocation14], 4294966272  ;;  %v4041_v0 = vmov 0.0   ;;  %v545_v1 = vld [vmem:[%s473_s19] sm:$0xff]  ;;  %v3695_v4 = vld [vmem:[#allocation10 + $0x10] sm:$0xff]   ;;  %vm4042_vm0 = vmmov 0   ;;  %v954_v52 = vlaneseq }
  0xde   : > { %3395 = vmatprep.subr.bf16.mxu0 %v4041_v0  ;;  %3415 = vmatprep.subr.bf16.mxu1 %v4041_v0  ;;  %v3693_v2 = vld [vmem:[#allocation10] sm:$0xff]   ;;  %v3694_v3 = vld [vmem:[#allocation10 + $0x8] sm:$0xff]   ;;  %v3696_v5 = vld [vmem:[#allocation10 + $0x18] sm:$0xff]   ;;  %s4043_s15 = smov 112   ;;  %s4044_s12 = smov 80   ;;  %vm1838_vm1 = vcmask 130048  }
  0xdf   : > { %786 = vadd.xlane.f32.xlu0 %v545_v1  ;;  %3396 = vmatpush3.bf16.msra.mxu0 %v3693_v2  ;;  %v3697_v6 = vld [vmem:[#allocation10 + $0x20] sm:$0xff]   ;;  %v3698_v7 = vld [vmem:[#allocation10 + $0x28] sm:$0xff]   ;;  %v3699_v8 = vld [vmem:[#allocation10 + $0x30] sm:$0xff]   ;;  %s4045_s30 = smov 96   ;;  %s4046_s10 = smov 64   ;;  %v955_v55 = vshrl.u32 %v954_v52, 7 }
  0xe0   : > { %3397 = vmatprep.subr.bf16.mxu0 %v4041_v0  ;;  %3411 = vmatprep.mubr.msk.bf16.mxu0 %vm4042_vm0, %v4041_v0  ;;  %v3700_v9 = vld [vmem:[#allocation10 + $0x38] sm:$0xff]   ;;  %v3702_v11 = vld [vmem:[#allocation9] sm:$0xff]   ;;  %v3703_v12 = vld [vmem:[#allocation9 + $0x8] sm:$0xff]   ;;  %s4047_s4 = smov 48   ;;  %s4048_s17 = smov 32   ;;  %vm2948_vm2 = vcmask 261120  }
  0xe1   : > { %3431 = vmatprep.mubr.msk.bf16.mxu1 %vm4042_vm0, %v4041_v0  ;;  %v4440_v10 = vld [vmem:[%s482_s6] sm:$0xff]   ;;  %v3706_v19 = vld [vmem:[#allocation9 + $0x20] sm:$0xff]   ;;  %v3707_v20 = vld [vmem:[#allocation9 + $0x28] sm:$0xff]   ;;  %s4049_s9 = smov 16   ;;  %s4962_s28 = sld [smem:[#allocation24_spill]]  ;;  %vm2950_vm3 = vcmask 392192  }
  0xe2   : > { %v3704_v17 = vld [vmem:[#allocation9 + $0x10] sm:$0xff]   ;;  %v3705_v18 = vld [vmem:[#allocation9 + $0x18] sm:$0xff]   ;;  %v3251_v23 = vld [vmem:[%s4917_s8] ss:$0 sm:$0xff]  ;;  %v4050_v53 = vmov 1983009808  }
  0xe3   : > { %3398 = vmatpush3.bf16.msra.mxu0 %v3694_v3  ;;  %v3708_v21 = vld [vmem:[#allocation9 + $0x30] sm:$0xff]   ;;  %v3709_v22 = vld [vmem:[#allocation9 + $0x38] sm:$0xff]   ;;  %v3710_v28 = vld [vmem:[#allocation12] sm:$0xff]   ;;  %v952_v54 = vunpack.c.l.s4 %v4050_v53  ;;  %v4051_v3 = vmov 1934713408   ;;  %s4963_s27 = sld [smem:[#allocation28_spill]] }
  0xe4   : > { %3399 = vmatprep.subr.bf16.mxu0 %v4041_v0  ;;  %3416 = vmatpush3.bf16.msra.mxu1 %v3710_v28  ;;  %v3711_v32 = vld [vmem:[#allocation12 + $0x8] sm:$0xff]   ;;  %v3712_v33 = vld [vmem:[#allocation12 + $0x10] sm:$0xff]   ;;  %v3713_v34 = vld [vmem:[#allocation12 + $0x18] sm:$0xff]   ;;  %s4964_s5 = sld [smem:[#allocation29_spill]]  ;;  %vm2952_vm4 = vcmask 523264   ;;  %vm2954_vm5 = vcmask 654336  }
  0xe5   : > { %3417 = vmatprep.subr.bf16.mxu1 %v4041_v0  ;;  %v3714_v35 = vld [vmem:[#allocation12 + $0x20] sm:$0xff]   ;;  %v3715_v36 = vld [vmem:[#allocation12 + $0x28] sm:$0xff]   ;;  %v3716_v37 = vld [vmem:[#allocation12 + $0x30] sm:$0xff]   ;;  %v953_v59 = vunpack.c.0.s8 %v952_v54  ;;  %vm2956_vm6 = vcmask 785408   ;;  %vm2958_vm7 = vcmask 916480   ;;  %s3075_s6 = scalar_lea.sflag [#allocation6], %s4394_s24 }
  0xe6   : > { %v3717_v38 = vld [vmem:[#allocation12 + $0x38] sm:$0xff]   ;;  %v3270_v43 = vld [vmem:[%s4911_s2] ss:$0 sm:$0xff]  ;;  %p4968_p13 = scmp.ne.s32.totalorder %s4950_s29, 0 }
  0xe7   : > { %3400 = vmatpush3.bf16.msra.mxu0 %v3695_v4  ;;  %v3271_v45 = vld [vmem:[%s4962_s28] ss:$0 sm:$0xff]  ;;  %v969_v4 = vunpack.c.l.s4 %v4051_v3  ;;  %s4967_s28 = sld [smem:[#allocation32_spill]] }
  0xe8   : > { %3401 = vmatprep.subr.bf16.mxu0 %v4041_v0  ;;  %3418 = vmatpush3.bf16.msra.mxu1 %v3711_v32 }
  0xe9   : > { %3419 = vmatprep.subr.bf16.mxu1 %v4041_v0 }
  0xeb   : > { %3402 = vmatpush3.bf16.msra.mxu0 %v3696_v5 }
  0xec   : > { %3403 = vmatprep.subr.bf16.mxu0 %v4041_v0  ;;  %3420 = vmatpush3.bf16.msra.mxu1 %v3712_v33 }
  0xed   : > { %3421 = vmatprep.subr.bf16.mxu1 %v4041_v0 }
  0xef   : > { %3404 = vmatpush3.bf16.msra.mxu0 %v3697_v6 }
  0xf0   : > { %3405 = vmatprep.subr.bf16.mxu0 %v4041_v0  ;;  %3422 = vmatpush3.bf16.msra.mxu1 %v3713_v34 }
  0xf1   : > { %3423 = vmatprep.subr.bf16.mxu1 %v4041_v0 }
  0xf3   : > { %3406 = vmatpush3.bf16.msra.mxu0 %v3698_v7 }
  0xf4   : > { %3407 = vmatprep.subr.bf16.mxu0 %v4041_v0  ;;  %3424 = vmatpush3.bf16.msra.mxu1 %v3714_v35 }
  0xf5   : > { %3425 = vmatprep.subr.bf16.mxu1 %v4041_v0 }
  0xf7   : > { %3408 = vmatpush3.bf16.msra.mxu0 %v3699_v8  ;;  %v4499_v8 = vsub.s32 %v953_v59, %v955_v55 }
  0xf8   : > { %3409 = vmatprep.subr.bf16.mxu0 %v4041_v0  ;;  %3426 = vmatpush3.bf16.msra.mxu1 %v3715_v36 }
  0xf9   : > { %3427 = vmatprep.subr.bf16.mxu1 %v4041_v0 }
  0xfb   : > { %3410 = vmatpush3.bf16.msra.mxu0 %v3700_v9 }
  0xfc   : > { %3435 = vmatprep.subr.bf16.mxu0 %v4041_v0  ;;  %3428 = vmatpush3.bf16.msra.mxu1 %v3716_v37 }
  0xfd   : > { %3429 = vmatprep.subr.bf16.mxu1 %v4041_v0 }
  0xfe   : > { %3412 = vmatmul.mubr.bf16.vlgmr.msra.gmra.mrb[0].mxu0 %v4440_v10 }
  0xff   : > { %3436 = vmatpush3.bf16.msra.mxu0 %v3702_v11  ;;  %3451 = vmatprep.mubr.msk.bf16.mxu0 %vm4042_vm0, %v4041_v0 }
 0x100   : > { %3437 = vmatprep.subr.bf16.mxu0 %v4041_v0  ;;  %3430 = vmatpush3.bf16.msra.mxu1 %v3717_v38 }
 0x101   : > { %3455 = vmatprep.subr.bf16.mxu1 %v4041_v0 }
 0x103   : > { %3438 = vmatpush3.bf16.msra.mxu0 %v3703_v12  ;;  %3432 = vmatmul.mubr.bf16.vlgmr.msra.gmra.mrb[0].mxu1 %v4440_v10 }
 0x104   : > { %3439 = vmatprep.subr.bf16.mxu0 %v4041_v0  ;;  %3457 = vmatprep.mubr.msk.bf16.mxu1 %vm4042_vm0, %v4041_v0 }
 0x107   : > { %3440 = vmatpush3.bf16.msra.mxu0 %v3704_v17 }
 0x108   : > { %3441 = vmatprep.subr.bf16.mxu0 %v4041_v0 }
 0x10b   : > { %3442 = vmatpush3.bf16.msra.mxu0 %v3705_v18 }
 0x10c   : > { %3443 = vmatprep.subr.bf16.mxu0 %v4041_v0 }
 0x10f   : > { %3444 = vmatpush3.bf16.msra.mxu0 %v3706_v19 }
 0x110   : > { %3445 = vmatprep.subr.bf16.mxu0 %v4041_v0 }
 0x113   : > { %3446 = vmatpush3.bf16.msra.mxu0 %v3707_v20 }
 0x114   : > { %3447 = vmatprep.subr.bf16.mxu0 %v4041_v0 }
 0x117   : > { %3448 = vmatpush3.bf16.msra.mxu0 %v3708_v21 }
 0x118   : > { %3449 = vmatprep.subr.bf16.mxu0 %v4041_v0 }
 0x11b   : > { %3450 = vmatpush3.bf16.msra.mxu0 %v3709_v22 }
 0x11c   : > { %3503 = vmatprep.subr.bf16.mxu0 %v4041_v0 }
 0x16c   : > { %v787_v13 = vpop.xlane.xlu0 %786 }
 0x16d   : > { %v789_v14 = vmul.f32 0.0078125, %v787_v13 }
 0x16f   : > { %v4448_v15 = vsub.f32 %v545_v1, %v789_v14 }
 0x171   : > { %v791_v16 = vmul.f32 %v4448_v15, %v4448_v15 }
 0x173   : > { %792 = vadd.xlane.f32.xlu0 %v791_v16 }
 0x1d1   : > { %v663_v24 = vpop.f32.mrb[0].mxu0 }
 0x1d2   : > { %v664_v25 = vadd.f32 %v3251_v23, %v663_v24  ;;  %v3413_v26 = vpop.f32.mrb[1].mxu0 }
 0x1d3   : > { %v666_v27 = vpop.f32.mrb[2].mxu0 }
 0x1d4   : > { %v667_v29 = vadd.f32 %v3251_v23, %v666_v27  ;;  %v3414_v30 = vpop.f32.mrb[3].mxu0 }
 0x1d6   : > { %v4461_v31 = vpack.c.bf16 %v667_v29, %v664_v25 }
 0x1d8   : > { %1144 = vrot.lane.b32.xlu1 %v4461_v31, %s4043_s15  ;;  %1148 = vrot.lane.b32.xlu0 %v4461_v31, %s4044_s12  ;;  %v1162_v58 = vshrl.u32 %v4461_v31, 16 }
 0x1dc   : > { %1146 = vrot.lane.b32.xlu1 %v4461_v31, %s4045_s30 }
 0x1e0   : > { %1150 = vrot.lane.b32.xlu1 %v4461_v31, %s4046_s10 }
 0x1e4   : > { %1152 = vrot.lane.b32.xlu1 %v4461_v31, %s4047_s4 }
 0x1e8   : > { %1154 = vrot.lane.b32.xlu1 %v4461_v31, %s4048_s17 }
 0x1ec   : > { %1156 = vrot.lane.b32.xlu1 %v4461_v31, %s4049_s9 }
 0x200   : > { %v793_v39 = vpop.xlane.xlu0 %792 }
 0x201   : > { %v794_v40 = vmul.f32 0.0078125, %v793_v39 }
 0x203   : > { %v795_v41 = vadd.f32 1e-05, %v794_v40 }
 0x205   : > { %3726 = vrsqrt.f32 %v795_v41 }
 0x20f   : > { %v3727_v42 = vpop.eup %3726 }
 0x210   : > { %v797_v44 = vmul.f32 %v3727_v42, %v4448_v15  ;;  %v970_v15 = vunpack.c.0.s8 %v969_v4 }
 0x212   : > { %v805_v46 = vmul.f32 %v3270_v43, %v797_v44  ;;  %v4503_v26 = vsub.s32 %v970_v15, %v955_v55 }
 0x214   : > { %v813_v47 = vadd.f32 %v3271_v45, %v805_v46 }
 0x216   : > { %v814_v48 = vpack.c.bf16 %v813_v47, %v813_v47 }
 0x218   : > { %3452 = vmatmul.mubr.bf16.vlgmr.msra.gmra.mrb[4].mxu0 %v814_v48 }
 0x219   : > { %3505 = vmatprep.mubr.msk.bf16.mxu0 %vm4042_vm0, %v4041_v0 }
 0x24a   : > { %v1145_v49 = vpop.permute.xlu1 %1144  ;;  %v1149_v1 = vpop.permute.xlu0 %1148 }
 0x24b   : > { %v1160_v57 = vpack.i.b16 %v1145_v49, %v4461_v31  ;;  %v1163_v60 = vshrl.u32 %v1145_v49, 16  ;;  %v1171_v6 = vshrl.u32 %v1149_v1, 16 }
 0x24d   : > { %v1164_v7 = vpack.i.b16 %v1163_v60, %v1162_v58 }
 0x24e   : > { %v1147_v50 = vpop.permute.xlu1 %1146 }
 0x24f   : > { %v1170_v5 = vshrl.u32 %v1147_v50, 16  ;;  %v1168_v13 = vpack.i.b16 %v1149_v1, %v1147_v50 }
 0x251   : > { %v1172_v18 = vpack.i.b16 %v1171_v6, %v1170_v5 }
 0x252   : > { %v1151_v51 = vpop.permute.xlu1 %1150 }
 0x253   : > { %v1178_v61 = vshrl.u32 %v1151_v51, 16 }
 0x256   : > { %v1153_v56 = vpop.permute.xlu1 %1152 }
 0x257   : > { %v1176_v62 = vpack.i.b16 %v1153_v56, %v1151_v51  ;;  %v1179_v63 = vshrl.u32 %v1153_v56, 16 }
 0x259   : > { %v1180_v9 = vpack.i.b16 %v1179_v63, %v1178_v61  ;;  %v1190_v10 = vcombine.low %v1160_v57, %v1176_v62  ;;  %v1191_v11 = vcombine.high %v1160_v57, %v1176_v62 }
 0x25a   : > { %v1155_v2 = vpop.permute.xlu1 %1154 }
 0x25b   : > { %v1186_v12 = vshrl.u32 %v1155_v2, 16  ;;  %v1198_v19 = vrot.slane %v1190_v10, %v4499_v8  ;;  %v1258_v20 = vcombine.low %v1164_v7, %v1180_v9  ;;  %v1259_v21 = vcombine.high %v1164_v7, %v1180_v9 }
 0x25c   : > { %v1205_v22 = vrot.slane %v1191_v11, %v4499_v8 }
 0x25d   : > { %v1266_v31 = vrot.slane %v1258_v20, %v4499_v8  ;;  %v1273_v32 = vrot.slane %v1259_v21, %v4499_v8 }
 0x25e   : > { %v1157_v14 = vpop.permute.xlu1 %1156 }
 0x25f   : > { %v1184_v16 = vpack.i.b16 %v1157_v14, %v1155_v2  ;;  %v1187_v17 = vshrl.u32 %v1157_v14, 16 }
 0x261   : > { %v1188_v23 = vpack.i.b16 %v1187_v17, %v1186_v12  ;;  %v1206_v24 = vcombine.low %v1168_v13, %v1184_v16  ;;  %v1207_v25 = vcombine.high %v1168_v13, %v1184_v16 }
 0x263   : > { %v1214_v27 = vrot.slane %v1206_v24, %v4499_v8  ;;  %v1221_v28 = vrot.slane %v1207_v25, %v4499_v8  ;;  %v1274_v29 = vcombine.low %v1172_v18, %v1188_v23  ;;  %v1275_v30 = vcombine.high %v1172_v18, %v1188_v23 }
 0x265   : > { %v1222_v33 = vcombine.low %v1198_v19, %v1214_v27  ;;  %v1223_v34 = vcombine.high %v1198_v19, %v1214_v27  ;;  %v1238_v35 = vcombine.low %v1205_v22, %v1221_v28  ;;  %v1239_v36 = vcombine.high %v1205_v22, %v1221_v28 }
 0x266   : > { %v1282_v37 = vrot.slane %v1274_v29, %v4499_v8  ;;  %v1289_v38 = vrot.slane %v1275_v30, %v4499_v8 }
 0x267   : > { %v1230_v39 = vrot.slane %v1222_v33, %v4503_v26  ;;  %v1237_v40 = vrot.slane %v1223_v34, %v4503_v26  ;;  %v1246_v41 = vrot.slane %v1238_v35, %v4503_v26  ;;  %v1253_v42 = vrot.slane %v1239_v36, %v4503_v26 }
 0x268   : > { %v1290_v43 = vcombine.low %v1266_v31, %v1282_v37  ;;  %v1291_v44 = vcombine.high %v1266_v31, %v1282_v37  ;;  %v1306_v45 = vcombine.low %v1273_v32, %v1289_v38  ;;  %v1307_v46 = vcombine.high %v1273_v32, %v1289_v38 }
 0x269   : > { %v1326_v47 = vcombine.low %v1230_v39, %v1237_v40  ;;  %v3281_v48 = vcombine.high %v1230_v39, %v1237_v40  ;;  %v1342_v49 = vcombine.low %v1246_v41, %v1253_v42  ;;  %v3282_v50 = vcombine.high %v1246_v41, %v1253_v42 }
 0x26a   : > { %v1298_v51 = vrot.slane %v1290_v43, %v4503_v26  ;;  %v1305_v52 = vrot.slane %v1291_v44, %v4503_v26  ;;  %v1314_v53 = vrot.slane %v1306_v45, %v4503_v26  ;;  %v1321_v54 = vrot.slane %v1307_v46, %v4503_v26 }
 0x26b   : > { %v1333_v55 = vrot.slane %v1326_v47, %v4499_v8  ;;  %v1341_v56 = vrot.slane %v3281_v48, %v4499_v8  ;;  %v1349_v57 = vrot.slane %v1342_v49, %v4499_v8  ;;  %v1357_v58 = vrot.slane %v3282_v50, %v4499_v8  ;;  %v3272_v47 = vld [vmem:[%s4963_s27] ss:$0 sm:$0xff] }
 0x26c   : > { %v1394_v59 = vcombine.low %v1298_v51, %v1305_v52  ;;  %v3283_v60 = vcombine.high %v1298_v51, %v1305_v52  ;;  %v1410_v61 = vcombine.low %v1314_v53, %v1321_v54  ;;  %v3284_v62 = vcombine.high %v1314_v53, %v1321_v54 }
 0x26d   : > { %v1358_v63 = vcombine.low %v1333_v55, %v1341_v56  ;;  %v1374_v1 = vcombine.low %v1349_v57, %v1357_v58  ;;  %v1359_v2 = vcombine.high %v1333_v55, %v1341_v56  ;;  %v1375_v3 = vcombine.high %v1349_v57, %v1357_v58  ;;  %v3261_v55 = vld [vmem:[%s4964_s5] ss:$0 sm:$0xff]  ;;  %v775_v56 = vpop.f32.mrb[0].mxu1 }
 0x26e   : > { %v1401_v4 = vrot.slane %v1394_v59, %v4499_v8  ;;  %v1409_v5 = vrot.slane %v3283_v60, %v4499_v8  ;;  %v1417_v6 = vrot.slane %v1410_v61, %v4499_v8  ;;  %v1425_v7 = vrot.slane %v3284_v62, %v4499_v8  ;;  %v3433_v58 = vpop.f32.mrb[1].mxu1 }
 0x26f   : > { %v1366_v9 = vrot.slane %v1358_v63, %v4503_v26  ;;  %v1382_v10 = vrot.slane %v1374_v1, %v4503_v26  ;;  %v1373_v11 = vrot.slane %v1359_v2, %v4503_v26  ;;  %v1389_v12 = vrot.slane %v1375_v3, %v4503_v26  ;;  %v778_v59 = vpop.f32.mrb[2].mxu1 }
 0x270   : > { %v1426_v13 = vcombine.low %v1401_v4, %v1409_v5  ;;  %v1442_v14 = vcombine.low %v1417_v6, %v1425_v7  ;;  %v1427_v15 = vcombine.high %v1401_v4, %v1409_v5  ;;  %v1443_v16 = vcombine.high %v1417_v6, %v1425_v7  ;;  %v3434_v61 = vpop.f32.mrb[3].mxu1 }
 0x271   : > { %v1390_v17 = vcombine.low %v1366_v9, %v1382_v10  ;;  %v4531_v18 = vcombine.high %v1366_v9, %v1382_v10  ;;  %v4533_v19 = vcombine.low %v1373_v11, %v1389_v12  ;;  %v4535_v20 = vcombine.high %v1373_v11, %v1389_v12 }
 0x272   : > { %v1434_v21 = vrot.slane %v1426_v13, %v4503_v26  ;;  %v1450_v22 = vrot.slane %v1442_v14, %v4503_v26  ;;  %v1441_v23 = vrot.slane %v1427_v15, %v4503_v26  ;;  %v1457_v24 = vrot.slane %v1443_v16, %v4503_v26 }
 0x273   : > { %v1465_v25 = vshrl.u32 %v1390_v17, 16  ;;  %v1471_v27 = vshrl.u32 %v4531_v18, 16  ;;  %v1477_v32 = vshrl.u32 %v4533_v19, 16  ;;  %v1483_v33 = vshrl.u32 %v4535_v20, 16 }
 0x274   : > { %v1458_v28 = vcombine.low %v1434_v21, %v1450_v22  ;;  %v4542_v29 = vcombine.high %v1434_v21, %v1450_v22  ;;  %v4544_v30 = vcombine.low %v1441_v23, %v1457_v24  ;;  %v4546_v31 = vcombine.high %v1441_v23, %v1457_v24 }
 0x275   : > { %v776_v57 = vadd.f32 %v3261_v55, %v775_v56  ;;  %v779_v60 = vadd.f32 %v3261_v55, %v778_v59 }
 0x276   : > { %v1464_v34 = vpack.i.b16 %v1458_v28, %v1390_v17  ;;  %v1466_v35 = vshrl.u32 %v1458_v28, 16  ;;  %v1470_v36 = vpack.i.b16 %v4542_v29, %v4531_v18  ;;  %v1472_v37 = vshrl.u32 %v4542_v29, 16 }
 0x277   : > { %v1476_v38 = vpack.i.b16 %v4544_v30, %v4533_v19  ;;  %v1478_v39 = vshrl.u32 %v4544_v30, 16  ;;  %v1482_v40 = vpack.i.b16 %v4546_v31, %v4535_v20  ;;  %v1484_v41 = vshrl.u32 %v4546_v31, 16 }
 0x278   : > { %v1843_v42 = vsel %vm1838_vm1, %v1464_v34, 0  ;;  %v4560_v43 = vpack.i.b16 %v1466_v35, %v1465_v25  ;;  %v4562_v44 = vpack.i.b16 %v1472_v37, %v1471_v27  ;;  %v4582_v62 = vpack.c.bf16 %v779_v60, %v776_v57 }
 0x279   : > { %3456 = vmatpush3.bf16.xpose.msra.mxu1 %v1843_v42  ;;  %v4564_v45 = vpack.i.b16 %v1478_v39, %v1477_v32  ;;  %v4566_v46 = vpack.i.b16 %v1484_v41, %v1483_v33  ;;  %v4052_v25 = vmov 0  }
 0x27a   : > { %3461 = vmatprep.subr.bf16.mxu1 %v4041_v0 }
 0x2eb   : > { %v920_v48 = vpop.f32.mrb[4].mxu0 }
 0x2ec   : > { %v921_v49 = vadd.f32 %v3272_v47, %v920_v48  ;;  %v3453_v50 = vpop.f32.mrb[5].mxu0 }
 0x2ed   : > { %v923_v51 = vpop.f32.mrb[6].mxu0 }
 0x2ee   : > { %v926_v52 = vmul.f32 0.25, %v921_v49  ;;  %v3454_v53 = vpop.f32.mrb[7].mxu0 }
 0x2f0   : > { %v927_v54 = vpack.c.bf16 %v926_v52, %v926_v52 }
 0x2f2   : > { %935 = vrot.lane.b32.xlu0 %v927_v54, %s4044_s12  ;;  %929 = vrot.lane.b32.xlu1 %v927_v54, %s4043_s15 }
 0x2f6   : > { %941 = vrot.lane.b32.xlu0 %v927_v54, %s4047_s4  ;;  %932 = vrot.lane.b32.xlu1 %v927_v54, %s4045_s30 }
 0x2fa   : > { %947 = vrot.lane.b32.xlu0 %v927_v54, %s4049_s9  ;;  %938 = vrot.lane.b32.xlu1 %v927_v54, %s4046_s10 }
 0x2fe   : > { %944 = vrot.lane.b32.xlu1 %v927_v54, %s4048_s17 }
 0x364   : > { %v930_v63 = vpop.permute.xlu1 %929  ;;  %v936_v1 = vpop.permute.xlu0 %935 }
 0x368   : > { %v933_v2 = vpop.permute.xlu1 %932  ;;  %v942_v3 = vpop.permute.xlu0 %941 }
 0x369   : > { %v984_v4 = vcombine.low %v930_v63, %v942_v3 }
 0x36b   : > { %v991_v9 = vrot.slane %v984_v4, %v4499_v8 }
 0x36c   : > { %v939_v5 = vpop.permute.xlu1 %938  ;;  %v948_v6 = vpop.permute.xlu0 %947 }
 0x36d   : > { %v992_v7 = vcombine.low %v936_v1, %v948_v6  ;;  %v950_v11 = vcombine.low %v927_v54, %v939_v5 }
 0x36f   : > { %v999_v10 = vrot.slane %v992_v7, %v4499_v8  ;;  %v957_v21 = vrot.slane %v950_v11, %v4499_v8  ;;  %v1889_v11 = vsel %vm1838_vm1, %v4560_v43, 0 }
 0x370   : > { %v945_v12 = vpop.permute.xlu1 %944 }
 0x371   : > { %v1000_v13 = vcombine.low %v991_v9, %v999_v10  ;;  %v1001_v14 = vcombine.high %v991_v9, %v999_v10  ;;  %v958_v15 = vcombine.low %v933_v2, %v945_v12 }
 0x373   : > { %v1008_v16 = vrot.slane %v1000_v13, %v4503_v26  ;;  %v965_v17 = vrot.slane %v958_v15, %v4499_v8  ;;  %v1015_v22 = vrot.slane %v1001_v14, %v4503_v26  ;;  %v1935_v15 = vsel %vm1838_vm1, %v1470_v36, 0 }
 0x375   : > { %v966_v23 = vcombine.low %v957_v21, %v965_v17  ;;  %v967_v24 = vcombine.high %v957_v21, %v965_v17  ;;  %v1016_v27 = vcombine.high %v1008_v16, %v4052_v25  ;;  %v1017_v33 = vcombine.high %v1015_v22, %v4052_v25 }
 0x376   : > { %v1023_v34 = vshrl.u32 %v1008_v16, 16  ;;  %v1039_v47 = vshrl.u32 %v1015_v22, 16  ;;  %v1981_v21 = vsel %vm1838_vm1, %v4562_v44, 0 }
 0x377   : > { %v974_v28 = vrot.slane %v966_v23, %v4503_v26  ;;  %v981_v32 = vrot.slane %v967_v24, %v4503_v26  ;;  %v1031_v42 = vshrl.u32 %v1016_v27, 16  ;;  %v1047_v54 = vshrl.u32 %v1017_v33, 16 }
 0x378   : > { %v2027_v24 = vsel %vm1838_vm1, %v1476_v38, 0 }
 0x379   : > { %v982_v35 = vcombine.high %v974_v28, %v4052_v25  ;;  %v983_v37 = vcombine.high %v981_v32, %v4052_v25  ;;  %v1020_v39 = vpack.i.b16 %v1008_v16, %v974_v28  ;;  %v1022_v41 = vshrl.u32 %v974_v28, 16 }
 0x37a   : > { %v1036_v48 = vpack.i.b16 %v1015_v22, %v981_v32  ;;  %v1038_v49 = vshrl.u32 %v981_v32, 16  ;;  %v2073_v32 = vsel %vm1838_vm1, %v4564_v45, 0 }
 0x37b   : > { %v1024_v50 = vpack.i.b16 %v1023_v34, %v1022_v41  ;;  %v1028_v51 = vpack.i.b16 %v1016_v27, %v982_v35  ;;  %v1030_v52 = vshrl.u32 %v982_v35, 16  ;;  %v1044_v53 = vpack.i.b16 %v1017_v33, %v983_v37 }
 0x37c   : > { %v1040_v55 = vpack.i.b16 %v1039_v47, %v1038_v49  ;;  %v1046_v56 = vshrl.u32 %v983_v37, 16  ;;  %v1050_v57 = vcombine.low %v1020_v39, %v1036_v48  ;;  %v2119_v33 = vsel %vm1838_vm1, %v1482_v40, 0 }
 0x37d   : > { %v1032_v58 = vpack.i.b16 %v1031_v42, %v1030_v52  ;;  %v1058_v59 = vcombine.low %v1028_v51, %v1044_v53  ;;  %v2165_v37 = vsel %vm1838_vm1, %v4566_v46, 0 }
 0x37e   : > { %v1048_v60 = vpack.i.b16 %v1047_v54, %v1046_v56  ;;  %v1084_v61 = vcombine.low %v1024_v50, %v1040_v55  ;;  %v1057_v1 = vrot.slane %v1050_v57, %v4499_v8 }
 0x37f   : > { %v1065_v63 = vrot.slane %v1058_v59, %v4499_v8 }
 0x380   : > { %v1092_v2 = vcombine.low %v1032_v58, %v1048_v60  ;;  %v1091_v4 = vrot.slane %v1084_v61, %v4499_v8 }
 0x381   : > { %v1066_v3 = vcombine.low %v1057_v1, %v1065_v63  ;;  %v1067_v23 = vcombine.high %v1057_v1, %v1065_v63 }
 0x382   : > { %v1099_v5 = vrot.slane %v1092_v2, %v4499_v8 }
 0x383   : > { %v1074_v7 = vrot.slane %v1066_v3, %v4503_v26  ;;  %v1081_v27 = vrot.slane %v1067_v23, %v4503_v26 }
 0x384   : > { %v1100_v6 = vcombine.low %v1091_v4, %v1099_v5  ;;  %v1101_v22 = vcombine.high %v1091_v4, %v1099_v5 }
 0x385   : > { %v1121_v13 = vshrl.u32 %v1074_v7, 16  ;;  %v1082_v16 = vcombine.high %v1074_v7, %v4052_v25  ;;  %v1133_v30 = vshrl.u32 %v1081_v27, 16  ;;  %v1083_v34 = vcombine.high %v1081_v27, %v4052_v25 }
 0x386   : > { %v1108_v9 = vrot.slane %v1100_v6, %v4503_v26  ;;  %v1115_v44 = vrot.slane %v1101_v22, %v4503_v26 }
 0x387   : > { %v1127_v29 = vshrl.u32 %v1082_v16, 16  ;;  %v1139_v31 = vshrl.u32 %v1083_v34, 16 }
 0x388   : > { %v1120_v10 = vpack.i.b16 %v1108_v9, %v1074_v7  ;;  %v1122_v12 = vshrl.u32 %v1108_v9, 16  ;;  %v1116_v43 = vcombine.high %v1108_v9, %v4052_v25  ;;  %v1132_v28 = vpack.i.b16 %v1115_v44, %v1081_v27 }
 0x389   : > { %v1134_v19 = vshrl.u32 %v1115_v44, 16  ;;  %v1117_v45 = vcombine.high %v1115_v44, %v4052_v25 }
 0x38a   : > { %3458 = vmatmul.mubr.msk.bf16.vlgmr.msra.gmra.mrb[4].mxu1 %vm1838_vm1, %v1120_v10  ;;  %v1123_v14 = vpack.i.b16 %v1122_v12, %v1121_v13  ;;  %v1126_v17 = vpack.i.b16 %v1116_v43, %v1082_v16  ;;  %v1128_v18 = vshrl.u32 %v1116_v43, 16 }
 0x38b   : > { %3462 = vmatpush3.bf16.xpose.msra.mxu1 %v1889_v11  ;;  %3463 = vmatprep.mubr.msk.bf16.mxu1 %vm4042_vm0, %v4041_v0  ;;  %v1135_v38 = vpack.i.b16 %v1134_v19, %v1133_v30  ;;  %v1138_v35 = vpack.i.b16 %v1117_v45, %v1083_v34  ;;  %v1140_v20 = vshrl.u32 %v1117_v45, 16 }
 0x38c   : > { %3467 = vmatprep.subr.bf16.mxu1 %v4041_v0  ;;  %v1129_v36 = vpack.i.b16 %v1128_v18, %v1127_v29 }
 0x38d   : > { %v1141_v40 = vpack.i.b16 %v1140_v20, %v1139_v31 }
 0x392   : > { %3464 = vmatmul.mubr.msk.bf16.vlgmr.msra.gmra.mrb[8].mxu1 %vm1838_vm1, %v1123_v14 }
 0x393   : > { %3468 = vmatpush3.bf16.xpose.msra.mxu1 %v1935_v15  ;;  %3469 = vmatprep.mubr.msk.bf16.mxu1 %vm4042_vm0, %v4041_v0 }
 0x394   : > { %3473 = vmatprep.subr.bf16.mxu1 %v4041_v0 }
 0x39a   : > { %3470 = vmatmul.mubr.msk.bf16.vlgmr.msra.gmra.mrb[12].mxu1 %vm1838_vm1, %v1126_v17 }
 0x39b   : > { %3474 = vmatpush3.bf16.xpose.msra.mxu1 %v1981_v21  ;;  %3475 = vmatprep.mubr.msk.bf16.mxu1 %vm4042_vm0, %v4041_v0 }
 0x39c   : > { %3479 = vmatprep.subr.bf16.mxu1 %v4041_v0 }
 0x3a2   : > { %3476 = vmatmul.mubr.msk.bf16.vlgmr.msra.gmra.mrb[16].mxu1 %vm1838_vm1, %v1129_v36 }
 0x3a3   : > { %3480 = vmatpush3.bf16.xpose.msra.mxu1 %v2027_v24  ;;  %3481 = vmatprep.mubr.msk.bf16.mxu1 %vm4042_vm0, %v4041_v0 }
 0x3a4   : > { %3485 = vmatprep.subr.bf16.mxu1 %v4041_v0 }
 0x3aa   : > { %3482 = vmatmul.mubr.msk.bf16.vlgmr.msra.gmra.mrb[20].mxu1 %vm1838_vm1, %v1132_v28 }
 0x3ab   : > { %3486 = vmatpush3.bf16.xpose.msra.mxu1 %v2073_v32  ;;  %3487 = vmatprep.mubr.msk.bf16.mxu1 %vm4042_vm0, %v4041_v0 }
 0x3ac   : > { %3491 = vmatprep.subr.bf16.mxu1 %v4041_v0 }
 0x3b2   : > { %3488 = vmatmul.mubr.msk.bf16.vlgmr.msra.gmra.mrb[24].mxu1 %vm1838_vm1, %v1135_v38 }
 0x3b3   : > { %3492 = vmatpush3.bf16.xpose.msra.mxu1 %v2119_v33  ;;  %3493 = vmatprep.mubr.msk.bf16.mxu1 %vm4042_vm0, %v4041_v0 }
 0x3b4   : > { %3497 = vmatprep.subr.bf16.mxu1 %v4041_v0 }
 0x3ba   : > { %3494 = vmatmul.mubr.msk.bf16.vlgmr.msra.gmra.mrb[28].mxu1 %vm1838_vm1, %v1138_v35 }
 0x3bb   : > { %3498 = vmatpush3.bf16.xpose.msra.mxu1 %v2165_v37  ;;  %3499 = vmatprep.mubr.msk.bf16.mxu1 %vm4042_vm0, %v4041_v0 }
 0x3bc   : > { %3509 = vmatprep.subr.bf16.mxu1 %v4041_v0 }
 0x3c2   : > { %3500 = vmatmul.mubr.msk.bf16.vlgmr.msra.gmra.mrb[32].mxu1 %vm1838_vm1, %v1141_v40 }
 0x3c3   : > { %3511 = vmatprep.mubr.msk.bf16.mxu1 %vm4042_vm0, %v4041_v0 }
 0x45d   : > { %v1879_v25 = vpop.f32.mrb[4].mxu1 }
 0x45e   : > { %v3459_v39 = vpop.f32.mrb[5].mxu1  ;;  %v2207_v41 = vsel %vm1838_vm1, %v1879_v25, -inf }
 0x45f   : > { %2208 = vmax.xlane.f32.xlu1 %v2207_v41  ;;  %v1882_v46 = vpop.f32.mrb[6].mxu1 }
 0x460   : > { %v3460_v42 = vpop.f32.mrb[7].mxu1 }
 0x465   : > { %v1925_v47 = vpop.f32.mrb[8].mxu1 }
 0x466   : > { %v3465_v48 = vpop.f32.mrb[9].mxu1  ;;  %v2210_v49 = vsel %vm1838_vm1, %v1925_v47, -inf }
 0x467   : > { %2211 = vmax.xlane.f32.xlu0 %v2210_v49  ;;  %v1928_v50 = vpop.f32.mrb[10].mxu1 }
 0x468   : > { %v3466_v51 = vpop.f32.mrb[11].mxu1 }
 0x46d   : > { %v1971_v52 = vpop.f32.mrb[12].mxu1 }
 0x46e   : > { %v3471_v53 = vpop.f32.mrb[13].mxu1  ;;  %v2213_v54 = vsel %vm1838_vm1, %v1971_v52, -inf }
 0x46f   : > { %2214 = vmax.xlane.f32.xlu0 %v2213_v54  ;;  %v1974_v55 = vpop.f32.mrb[14].mxu1 }
 0x470   : > { %v3472_v56 = vpop.f32.mrb[15].mxu1 }
 0x475   : > { %v2017_v57 = vpop.f32.mrb[16].mxu1 }
 0x476   : > { %v3477_v58 = vpop.f32.mrb[17].mxu1  ;;  %v2216_v59 = vsel %vm1838_vm1, %v2017_v57, -inf }
 0x477   : > { %2217 = vmax.xlane.f32.xlu1 %v2216_v59  ;;  %v2020_v60 = vpop.f32.mrb[18].mxu1 }
 0x478   : > { %v3478_v61 = vpop.f32.mrb[19].mxu1 }
 0x47d   : > { %v2063_v63 = vpop.f32.mrb[20].mxu1 }
 0x47e   : > { %v3483_v1 = vpop.f32.mrb[21].mxu1  ;;  %v2219_v2 = vsel %vm1838_vm1, %v2063_v63, -inf }
 0x47f   : > { %2220 = vmax.xlane.f32.xlu0 %v2219_v2  ;;  %v2066_v3 = vpop.f32.mrb[22].mxu1 }
 0x480   : > { %v3484_v4 = vpop.f32.mrb[23].mxu1 }
 0x485   : > { %v2109_v5 = vpop.f32.mrb[24].mxu1 }
 0x486   : > { %v3489_v6 = vpop.f32.mrb[25].mxu1  ;;  %v2222_v7 = vsel %vm1838_vm1, %v2109_v5, -inf }
 0x487   : > { %2223 = vmax.xlane.f32.xlu1 %v2222_v7  ;;  %v2112_v9 = vpop.f32.mrb[26].mxu1 }
 0x488   : > { %v3490_v10 = vpop.f32.mrb[27].mxu1 }
 0x48d   : > { %v2155_v11 = vpop.f32.mrb[28].mxu1 }
 0x48e   : > { %v3495_v12 = vpop.f32.mrb[29].mxu1  ;;  %v2225_v13 = vsel %vm1838_vm1, %v2155_v11, -inf }
 0x48f   : > { %2226 = vmax.xlane.f32.xlu0 %v2225_v13  ;;  %v2158_v14 = vpop.f32.mrb[30].mxu1 }
 0x490   : > { %v3496_v15 = vpop.f32.mrb[31].mxu1 }
 0x495   : > { %v2201_v43 = vpop.f32.mrb[32].mxu1 }
 0x496   : > { %v3501_v16 = vpop.f32.mrb[33].mxu1  ;;  %v2228_v17 = vsel %vm1838_vm1, %v2201_v43, -inf }
 0x497   : > { %2229 = vmax.xlane.f32.xlu1 %v2228_v17  ;;  %v2204_v21 = vpop.f32.mrb[34].mxu1 }
 0x498   : > { %v3502_v18 = vpop.f32.mrb[35].mxu1 }
 0x4a5   : > { %1488 = vrot.lane.b32.xlu0 %v4582_v62, %s4043_s15 }
 0x4a8   : > { %1490 = vrot.lane.b32.xlu1 %v4582_v62, %s4045_s30 }
 0x4a9   : > { %1494 = vrot.lane.b32.xlu0 %v4582_v62, %s4046_s10 }
 0x4ac   : > { %1492 = vrot.lane.b32.xlu1 %v4582_v62, %s4044_s12 }
 0x4ad   : > { %1498 = vrot.lane.b32.xlu0 %v4582_v62, %s4048_s17 }
 0x4b0   : > { %1496 = vrot.lane.b32.xlu1 %v4582_v62, %s4047_s4 }
 0x4b4   : > { %1500 = vrot.lane.b32.xlu1 %v4582_v62, %s4049_s9 }
 0x4ec   : > { %v2209_v29 = vpop.xlane.xlu1 %2208 }
 0x4ed   : > { %v2231_v36 = vsub.f32 %v1879_v25, %v2209_v29 }
 0x4ef   : > { %v2239_v22 = vmul.f32 1.442695, %v2231_v36 }
 0x4f1   : > { %3728 = vpow2.f32 %v2239_v22 }
 0x4f4   : > { %v2212_v23 = vpop.xlane.xlu0 %2211 }
 0x4f5   : > { %v2232_v24 = vsub.f32 %v1925_v47, %v2212_v23 }
 0x4f7   : > { %v2241_v44 = vmul.f32 1.442695, %v2232_v24 }
 0x4f9   : > { %3730 = vpow2.f32 %v2241_v44 }
 0x4fb   : > { %v4681_v27 = vpop.eup %3728 }
 0x4fc   : > { %v2215_v28 = vpop.xlane.xlu0 %2214  ;;  %v2255_v32 = vsel %vm1838_vm1, %v4681_v27, 0.0 }
 0x4fd   : > { %v2233_v19 = vsub.f32 %v1971_v52, %v2215_v28  ;;  %2256 = vadd.xlane.f32.xlu0 %v2255_v32 }
 0x4ff   : > { %v2243_v30 = vmul.f32 1.442695, %v2233_v19 }
 0x501   : > { %3732 = vpow2.f32 %v2243_v30 }
 0x503   : > { %v4685_v38 = vpop.eup %3730 }
 0x504   : > { %v2218_v33 = vpop.xlane.xlu1 %2217  ;;  %v2258_v45 = vsel %vm1838_vm1, %v4685_v38, 0.0 }
 0x505   : > { %v2234_v34 = vsub.f32 %v2017_v57, %v2218_v33  ;;  %2259 = vadd.xlane.f32.xlu1 %v2258_v45 }
 0x507   : > { %v2245_v35 = vmul.f32 1.442695, %v2234_v34 }
 0x509   : > { %3734 = vpow2.f32 %v2245_v35 }
 0x50b   : > { %v4689_v37 = vpop.eup %3732 }
 0x50c   : > { %v2221_v20 = vpop.xlane.xlu0 %2220  ;;  %v2261_v31 = vsel %vm1838_vm1, %v4689_v37, 0.0 }
 0x50d   : > { %v2235_v40 = vsub.f32 %v2063_v63, %v2221_v20  ;;  %2262 = vadd.xlane.f32.xlu0 %v2261_v31 }
 0x50f   : > { %v2247_v25 = vmul.f32 1.442695, %v2235_v40 }
 0x511   : > { %3736 = vpow2.f32 %v2247_v25 }
 0x513   : > { %v4693_v39 = vpop.eup %3734 }
 0x514   : > { %v2224_v41 = vpop.xlane.xlu1 %2223  ;;  %v2264_v46 = vsel %vm1838_vm1, %v4693_v39, 0.0 }
 0x515   : > { %v2236_v42 = vsub.f32 %v2109_v5, %v2224_v41  ;;  %2265 = vadd.xlane.f32.xlu0 %v2264_v46 }
 0x517   : > { %v2249_v47 = vmul.f32 1.442695, %v2236_v42 }
 0x519   : > { %3738 = vpow2.f32 %v2249_v47 }
 0x51b   : > { %v4697_v48 = vpop.eup %3736 }
 0x51c   : > { %v2227_v49 = vpop.xlane.xlu0 %2226  ;;  %v2267_v50 = vsel %vm1838_vm1, %v4697_v48, 0.0 }
 0x51d   : > { %v2237_v51 = vsub.f32 %v2155_v11, %v2227_v49  ;;  %2268 = vadd.xlane.f32.xlu1 %v2267_v50  ;;  %v1506_v11 = vshrl.u32 %v4582_v62, 16 }
 0x51f   : > { %v2251_v52 = vmul.f32 1.442695, %v2237_v51 }
 0x520   : > { %v1489_v57 = vpop.permute.xlu0 %1488 }
 0x521   : > { %3740 = vpow2.f32 %v2251_v52  ;;  %v1504_v7 = vpack.i.b16 %v1489_v57, %v4582_v62  ;;  %v1507_v9 = vshrl.u32 %v1489_v57, 16 }
 0x523   : > { %v4701_v53 = vpop.eup %3738  ;;  %v1508_v22 = vpack.i.b16 %v1507_v9, %v1506_v11 }
 0x524   : > { %v2230_v54 = vpop.xlane.xlu1 %2229  ;;  %v2270_v55 = vsel %vm1838_vm1, %v4701_v53, 0.0  ;;  %v1495_v61 = vpop.permute.xlu0 %1494 }
 0x525   : > { %v2238_v56 = vsub.f32 %v2201_v43, %v2230_v54  ;;  %2271 = vadd.xlane.f32.xlu0 %v2270_v55  ;;  %v1522_v10 = vshrl.u32 %v1495_v61, 16 }
 0x527   : > { %v2253_v58 = vmul.f32 1.442695, %v2238_v56 }
 0x528   : > { %v1491_v59 = vpop.permute.xlu1 %1490  ;;  %v1499_v5 = vpop.permute.xlu0 %1498 }
 0x529   : > { %3742 = vpow2.f32 %v2253_v58  ;;  %v1530_v15 = vshrl.u32 %v1499_v5, 16  ;;  %v1514_v21 = vshrl.u32 %v1491_v59, 16 }
 0x52b   : > { %v4705_v60 = vpop.eup %3740 }
 0x52c   : > { %v1493_v63 = vpop.permute.xlu1 %1492  ;;  %v2273_v1 = vsel %vm1838_vm1, %v4705_v60, 0.0 }
 0x52d   : > { %2274 = vadd.xlane.f32.xlu1 %v2273_v1  ;;  %v1515_v12 = vshrl.u32 %v1493_v63, 16  ;;  %v1512_v18 = vpack.i.b16 %v1493_v63, %v1491_v59 }
 0x52f   : > { %v1516_v23 = vpack.i.b16 %v1515_v12, %v1514_v21 }
 0x530   : > { %v1497_v2 = vpop.permute.xlu1 %1496 }
 0x531   : > { %v1520_v3 = vpack.i.b16 %v1497_v2, %v1495_v61  ;;  %v1523_v4 = vshrl.u32 %v1497_v2, 16 }
 0x533   : > { %v4709_v6 = vpop.eup %3742  ;;  %v1524_v43 = vpack.i.b16 %v1523_v4, %v1522_v10  ;;  %v1534_v16 = vcombine.low %v1504_v7, %v1520_v3  ;;  %v1535_v17 = vcombine.high %v1504_v7, %v1520_v3 }
 0x534   : > { %v1501_v13 = vpop.permute.xlu1 %1500  ;;  %v2276_v14 = vsel %vm1838_vm1, %v4709_v6, 0.0 }
 0x535   : > { %2277 = vadd.xlane.f32.xlu0 %v2276_v14  ;;  %v1528_v29 = vpack.i.b16 %v1501_v13, %v1499_v5  ;;  %v1531_v36 = vshrl.u32 %v1501_v13, 16  ;;  %v1542_v62 = vrot.slane %v1534_v16, %v4499_v8  ;;  %v1549_v32 = vrot.slane %v1535_v17, %v4499_v8 }
 0x536   : > { %v1602_v19 = vcombine.low %v1508_v22, %v1524_v43  ;;  %v1603_v30 = vcombine.high %v1508_v22, %v1524_v43 }
 0x537   : > { %v1532_v24 = vpack.i.b16 %v1531_v36, %v1530_v15  ;;  %v1550_v44 = vcombine.low %v1512_v18, %v1528_v29  ;;  %v1551_v28 = vcombine.high %v1512_v18, %v1528_v29 }
 0x538   : > { %v1610_v41 = vrot.slane %v1602_v19, %v4499_v8  ;;  %v1617_v46 = vrot.slane %v1603_v30, %v4499_v8 }
 0x539   : > { %v1558_v33 = vrot.slane %v1550_v44, %v4499_v8  ;;  %v1565_v45 = vrot.slane %v1551_v28, %v4499_v8  ;;  %v1618_v34 = vcombine.low %v1516_v23, %v1532_v24  ;;  %v1619_v35 = vcombine.high %v1516_v23, %v1532_v24 }
 0x53b   : > { %v1566_v20 = vcombine.low %v1542_v62, %v1558_v33  ;;  %v1567_v31 = vcombine.high %v1542_v62, %v1558_v33  ;;  %v1582_v40 = vcombine.low %v1549_v32, %v1565_v45  ;;  %v1583_v25 = vcombine.high %v1549_v32, %v1565_v45 }
 0x53c   : > { %v1626_v42 = vrot.slane %v1618_v34, %v4499_v8  ;;  %v1633_v47 = vrot.slane %v1619_v35, %v4499_v8 }
 0x53d   : > { %v1574_v49 = vrot.slane %v1566_v20, %v4503_v26  ;;  %v1581_v50 = vrot.slane %v1567_v31, %v4503_v26  ;;  %v1590_v51 = vrot.slane %v1582_v40, %v4503_v26  ;;  %v1597_v52 = vrot.slane %v1583_v25, %v4503_v26 }
 0x53e   : > { %v1634_v54 = vcombine.low %v1610_v41, %v1626_v42  ;;  %v1635_v55 = vcombine.high %v1610_v41, %v1626_v42  ;;  %v1650_v56 = vcombine.low %v1617_v46, %v1633_v47  ;;  %v1651_v57 = vcombine.high %v1617_v46, %v1633_v47 }
 0x53f   : > { %v1670_v58 = vcombine.low %v1574_v49, %v1581_v50  ;;  %v3285_v59 = vcombine.high %v1574_v49, %v1581_v50  ;;  %v1686_v61 = vcombine.low %v1590_v51, %v1597_v52  ;;  %v3286_v63 = vcombine.high %v1590_v51, %v1597_v52 }
 0x540   : > { %v1642_v1 = vrot.slane %v1634_v54, %v4503_v26  ;;  %v1649_v2 = vrot.slane %v1635_v55, %v4503_v26  ;;  %v1658_v3 = vrot.slane %v1650_v56, %v4503_v26  ;;  %v1665_v4 = vrot.slane %v1651_v57, %v4503_v26 }
 0x541   : > { %v1677_v5 = vrot.slane %v1670_v58, %v4499_v8  ;;  %v1685_v7 = vrot.slane %v3285_v59, %v4499_v8  ;;  %v1693_v9 = vrot.slane %v1686_v61, %v4499_v8  ;;  %v1701_v10 = vrot.slane %v3286_v63, %v4499_v8 }
 0x542   : > { %v1738_v11 = vcombine.low %v1642_v1, %v1649_v2  ;;  %v3287_v12 = vcombine.high %v1642_v1, %v1649_v2  ;;  %v1754_v13 = vcombine.low %v1658_v3, %v1665_v4  ;;  %v3288_v14 = vcombine.high %v1658_v3, %v1665_v4 }
 0x543   : > { %v1702_v15 = vcombine.low %v1677_v5, %v1685_v7  ;;  %v1718_v43 = vcombine.low %v1693_v9, %v1701_v10  ;;  %v1703_v16 = vcombine.high %v1677_v5, %v1685_v7  ;;  %v1719_v17 = vcombine.high %v1693_v9, %v1701_v10 }
 0x544   : > { %v1745_v21 = vrot.slane %v1738_v11, %v4499_v8  ;;  %v1753_v18 = vrot.slane %v3287_v12, %v4499_v8  ;;  %v1761_v29 = vrot.slane %v1754_v13, %v4499_v8  ;;  %v1769_v36 = vrot.slane %v3288_v14, %v4499_v8 }
 0x545   : > { %v1710_v22 = vrot.slane %v1702_v15, %v4503_v26  ;;  %v1726_v23 = vrot.slane %v1718_v43, %v4503_v26  ;;  %v1717_v24 = vrot.slane %v1703_v16, %v4503_v26  ;;  %v1733_v44 = vrot.slane %v1719_v17, %v4503_v26 }
 0x546   : > { %v1770_v28 = vcombine.low %v1745_v21, %v1753_v18  ;;  %v1786_v62 = vcombine.low %v1761_v29, %v1769_v36  ;;  %v1771_v32 = vcombine.high %v1745_v21, %v1753_v18  ;;  %v1787_v19 = vcombine.high %v1761_v29, %v1769_v36 }
 0x547   : > { %v1734_v30 = vcombine.low %v1710_v22, %v1726_v23  ;;  %v1735_v33 = vcombine.high %v1710_v22, %v1726_v23  ;;  %v1736_v45 = vcombine.low %v1717_v24, %v1733_v44  ;;  %v4743_v34 = vcombine.high %v1717_v24, %v1733_v44 }
 0x548   : > { %v1778_v35 = vrot.slane %v1770_v28, %v4503_v26  ;;  %v1794_v20 = vrot.slane %v1786_v62, %v4503_v26  ;;  %v1785_v31 = vrot.slane %v1771_v32, %v4503_v26  ;;  %v1801_v40 = vrot.slane %v1787_v19, %v4503_v26 }
 0x549   : > { %v1810_v47 = vshrl.u32 %v1734_v30, 16  ;;  %v1818_v49 = vshrl.u32 %v1735_v33, 16  ;;  %v1826_v50 = vshrl.u32 %v1736_v45, 16  ;;  %v1834_v51 = vshrl.u32 %v4743_v34, 16 }
 0x54a   : > { %v1802_v25 = vcombine.low %v1778_v35, %v1794_v20  ;;  %v1803_v41 = vcombine.high %v1778_v35, %v1794_v20  ;;  %v1804_v46 = vcombine.low %v1785_v31, %v1801_v40  ;;  %v4749_v42 = vcombine.high %v1785_v31, %v1801_v40 }
 0x54c   : > { %v1808_v52 = vpack.i.b16 %v1802_v25, %v1734_v30  ;;  %v1811_v54 = vshrl.u32 %v1802_v25, 16  ;;  %v1816_v55 = vpack.i.b16 %v1803_v41, %v1735_v33  ;;  %v1819_v56 = vshrl.u32 %v1803_v41, 16 }
 0x54d   : > { %v1824_v57 = vpack.i.b16 %v1804_v46, %v1736_v45  ;;  %v1827_v58 = vshrl.u32 %v1804_v46, 16  ;;  %v1832_v59 = vpack.i.b16 %v4749_v42, %v4743_v34  ;;  %v1835_v61 = vshrl.u32 %v4749_v42, 16 }
 0x54e   : > { %3504 = vmatpush3.bf16.msra.mxu0 %v1808_v52  ;;  %v1812_v63 = vpack.i.b16 %v1811_v54, %v1810_v47  ;;  %v1820_v1 = vpack.i.b16 %v1819_v56, %v1818_v49 }
 0x54f   : > { %3515 = vmatprep.subr.bf16.mxu0 %v4041_v0  ;;  %v1828_v2 = vpack.i.b16 %v1827_v58, %v1826_v50  ;;  %v1836_v3 = vpack.i.b16 %v1835_v61, %v1834_v51 }
 0x550   : > { %3510 = vmatpush3.bf16.msra.mxu1 %v1812_v63 }
 0x551   : > { %3521 = vmatprep.subr.bf16.mxu1 %v4041_v0 }
 0x58a   : > { %v2257_v4 = vpop.xlane.xlu0 %2256 }
 0x58b   : > { %3744 = vrcp.f32 %v2257_v4 }
 0x592   : > { %v2260_v5 = vpop.xlane.xlu1 %2259 }
 0x593   : > { %3746 = vrcp.f32 %v2260_v5 }
 0x595   : > { %v3745_v7 = vpop.eup %3744 }
 0x596   : > { %v2287_v9 = vmul.f32 %v3745_v7, %v4681_v27 }
 0x598   : > { %v2295_v10 = vpack.c.bf16 %v2287_v9, %v2287_v9 }
 0x59a   : > { %v2263_v11 = vpop.xlane.xlu0 %2262  ;;  %3506 = vmatmul.mubr.msk.bf16.vlgmr.msra.gmra.mrb[8].mxu0 %vm1838_vm1, %v2295_v10 }
 0x59b   : > { %3748 = vrcp.f32 %v2263_v11  ;;  %3516 = vmatpush3.bf16.msra.mxu0 %v1816_v55  ;;  %3517 = vmatprep.mubr.msk.bf16.mxu0 %vm4042_vm0, %v4041_v0 }
 0x59c   : > { %3527 = vmatprep.subr.bf16.mxu0 %v4041_v0 }
 0x59d   : > { %v3747_v12 = vpop.eup %3746 }
 0x59e   : > { %v2288_v13 = vmul.f32 %v3747_v12, %v4685_v38 }
 0x5a0   : > { %v2296_v14 = vpack.c.bf16 %v2288_v13, %v2288_v13 }
 0x5a2   : > { %v2266_v15 = vpop.xlane.xlu0 %2265  ;;  %3512 = vmatmul.mubr.msk.bf16.vlgmr.msra.gmra.mrb[36].mxu1 %vm1838_vm1, %v2296_v14 }
 0x5a3   : > { %3750 = vrcp.f32 %v2266_v15  ;;  %3522 = vmatpush3.bf16.msra.mxu1 %v1820_v1  ;;  %3523 = vmatprep.mubr.msk.bf16.mxu1 %vm4042_vm0, %v4041_v0 }
 0x5a4   : > { %3533 = vmatprep.subr.bf16.mxu1 %v4041_v0 }
 0x5a5   : > { %v3749_v27 = vpop.eup %3748 }
 0x5a6   : > { %v2289_v43 = vmul.f32 %v3749_v27, %v4689_v37  ;;  %v3718_v27 = vld [vmem:[#allocation13] sm:$0xff]  }
 0x5a8   : > { %v2297_v16 = vpack.c.bf16 %v2289_v43, %v2289_v43 }
 0x5aa   : > { %3518 = vmatmul.mubr.msk.bf16.vlgmr.msra.gmra.mrb[12].mxu0 %vm1838_vm1, %v2297_v16  ;;  %v2269_v17 = vpop.xlane.xlu1 %2268 }
 0x5ab   : > { %3528 = vmatpush3.bf16.msra.mxu0 %v1824_v57  ;;  %3752 = vrcp.f32 %v2269_v17  ;;  %3529 = vmatprep.mubr.msk.bf16.mxu0 %vm4042_vm0, %v4041_v0 }
 0x5ac   : > { %3539 = vmatprep.subr.bf16.mxu0 %v4041_v0 }
 0x5ad   : > { %v3751_v38 = vpop.eup %3750 }
 0x5ae   : > { %v2290_v21 = vmul.f32 %v3751_v38, %v4693_v39 }
 0x5b0   : > { %v2298_v18 = vpack.c.bf16 %v2290_v21, %v2290_v21 }
 0x5b2   : > { %v2272_v29 = vpop.xlane.xlu0 %2271  ;;  %3524 = vmatmul.mubr.msk.bf16.vlgmr.msra.gmra.mrb[40].mxu1 %vm1838_vm1, %v2298_v18  ;;  %v3719_v18 = vld [vmem:[#allocation13 + $0x8] sm:$0xff]  }
 0x5b3   : > { %3754 = vrcp.f32 %v2272_v29  ;;  %3534 = vmatpush3.bf16.msra.mxu1 %v1828_v2  ;;  %3535 = vmatprep.mubr.msk.bf16.mxu1 %vm4042_vm0, %v4041_v0 }
 0x5b4   : > { %3545 = vmatprep.subr.bf16.mxu1 %v4041_v0 }
 0x5b5   : > { %v3753_v37 = vpop.eup %3752 }
 0x5b6   : > { %v2291_v36 = vmul.f32 %v3753_v37, %v4697_v48 }
 0x5b8   : > { %v2299_v22 = vpack.c.bf16 %v2291_v36, %v2291_v36 }
 0x5ba   : > { %3530 = vmatmul.mubr.msk.bf16.vlgmr.msra.gmra.mrb[16].mxu0 %vm1838_vm1, %v2299_v22  ;;  %v2275_v23 = vpop.xlane.xlu1 %2274 }
 0x5bb   : > { %3540 = vmatpush3.bf16.msra.mxu0 %v1832_v59  ;;  %3756 = vrcp.f32 %v2275_v23  ;;  %3541 = vmatprep.mubr.msk.bf16.mxu0 %vm4042_vm0, %v4041_v0 }
 0x5bc   : > { %3551 = vmatprep.subr.bf16.mxu0 %v4041_v0 }
 0x5bd   : > { %v3755_v39 = vpop.eup %3754 }
 0x5be   : > { %v2292_v24 = vmul.f32 %v3755_v39, %v4701_v53 }
 0x5c0   : > { %v2300_v44 = vpack.c.bf16 %v2292_v24, %v2292_v24 }
 0x5c2   : > { %v2278_v28 = vpop.xlane.xlu0 %2277  ;;  %3536 = vmatmul.mubr.msk.bf16.vlgmr.msra.gmra.mrb[44].mxu1 %vm1838_vm1, %v2300_v44 }
 0x5c3   : > { %3758 = vrcp.f32 %v2278_v28  ;;  %3546 = vmatpush3.bf16.msra.mxu1 %v1836_v3  ;;  %3547 = vmatprep.mubr.msk.bf16.mxu1 %vm4042_vm0, %v4041_v0 }
 0x5c5   : > { %v3757_v48 = vpop.eup %3756 }
 0x5c6   : > { %v2293_v62 = vmul.f32 %v3757_v48, %v4705_v60  ;;  %v3720_v48 = vld [vmem:[#allocation13 + $0x10] sm:$0xff]  }
 0x5c8   : > { %v2301_v32 = vpack.c.bf16 %v2293_v62, %v2293_v62 }
 0x5ca   : > { %3542 = vmatmul.mubr.msk.bf16.vlgmr.msra.gmra.mrb[20].mxu0 %vm1838_vm1, %v2301_v32 }
 0x5cb   : > { %3567 = vmatprep.mubr.msk.bf16.mxu0 %vm4042_vm0, %v4041_v0  ;;  %3552 = vmatpush3.bf16.msra.mxu0 %v3718_v27 }
 0x5cc   : > { %3553 = vmatprep.subr.bf16.mxu0 %v4041_v0 }
 0x5cd   : > { %v3759_v19 = vpop.eup %3758 }
 0x5ce   : > { %v2294_v53 = vmul.f32 %v3759_v19, %v4709_v6 }
 0x5cf   : > { %3554 = vmatpush3.bf16.msra.mxu0 %v3719_v18 }
 0x5d0   : > { %v2302_v30 = vpack.c.bf16 %v2294_v53, %v2294_v53  ;;  %3555 = vmatprep.subr.bf16.mxu0 %v4041_v0 }
 0x5d2   : > { %3548 = vmatmul.mubr.msk.bf16.vlgmr.msra.gmra.mrb[48].mxu1 %vm1838_vm1, %v2302_v30 }
 0x5d3   : > { %3556 = vmatpush3.bf16.msra.mxu0 %v3720_v48 }
 0x5d4   : > { %3557 = vmatprep.subr.bf16.mxu0 %v4041_v0 }
 0x66d   : > { %v2340_v33 = vpop.f32.mrb[8].mxu0 }
 0x66e   : > { %v3507_v45 = vpop.f32.mrb[9].mxu0 }
 0x66f   : > { %v2343_v34 = vpop.f32.mrb[10].mxu0 }
 0x670   : > { %v3508_v35 = vpop.f32.mrb[11].mxu0  ;;  %v3721_v34 = vld [vmem:[#allocation13 + $0x18] sm:$0xff]  }
 0x671   : > { %3558 = vmatpush3.bf16.msra.mxu0 %v3721_v34 }
 0x672   : > { %3559 = vmatprep.subr.bf16.mxu0 %v4041_v0 }
 0x675   : > { %v2383_v20 = vpop.f32.mrb[36].mxu1 }
 0x676   : > { %v3513_v31 = vpop.f32.mrb[37].mxu1 }
 0x677   : > { %v2386_v40 = vpop.f32.mrb[38].mxu1 }
 0x678   : > { %v3514_v60 = vpop.f32.mrb[39].mxu1 }
 0x67d   : > { %v2426_v25 = vpop.f32.mrb[12].mxu0 }
 0x67e   : > { %v2647_v41 = vcombine.low %v2340_v33, %v2426_v25  ;;  %v2648_v46 = vcombine.high %v2340_v33, %v2426_v25  ;;  %v3519_v42 = vpop.f32.mrb[13].mxu0 }
 0x67f   : > { %v2429_v47 = vpop.f32.mrb[14].mxu0 }
 0x680   : > { %v3520_v49 = vpop.f32.mrb[15].mxu0  ;;  %v2655_v55 = vrot.slane %v2647_v41, %v4499_v8  ;;  %v2662_v56 = vrot.slane %v2648_v46, %v4499_v8  ;;  %v3723_v46 = vld [vmem:[#allocation13 + $0x28] sm:$0xff]  }
 0x685   : > { %v2469_v50 = vpop.f32.mrb[40].mxu1 }
 0x686   : > { %v2663_v51 = vcombine.low %v2383_v20, %v2469_v50  ;;  %v2664_v6 = vcombine.high %v2383_v20, %v2469_v50  ;;  %v3525_v52 = vpop.f32.mrb[41].mxu1  ;;  %v3722_v20 = vld [vmem:[#allocation13 + $0x20] sm:$0xff]  }
 0x687   : > { %v2472_v54 = vpop.f32.mrb[42].mxu1  ;;  %3560 = vmatpush3.bf16.msra.mxu0 %v3722_v20 }
 0x688   : > { %v2671_v57 = vrot.slane %v2663_v51, %v4499_v8  ;;  %v2678_v58 = vrot.slane %v2664_v6, %v4499_v8  ;;  %v3526_v59 = vpop.f32.mrb[43].mxu1  ;;  %3561 = vmatprep.subr.bf16.mxu0 %v4041_v0 }
 0x68a   : > { %v2711_v61 = vcombine.low %v2655_v55, %v2671_v57  ;;  %v2712_v63 = vcombine.high %v2655_v55, %v2671_v57  ;;  %v2727_v1 = vcombine.low %v2662_v56, %v2678_v58  ;;  %v2728_v2 = vcombine.high %v2662_v56, %v2678_v58 }
 0x68b   : > { %3562 = vmatpush3.bf16.msra.mxu0 %v3723_v46 }
 0x68c   : > { %v2719_v3 = vrot.slane %v2711_v61, %v4503_v26  ;;  %v2726_v4 = vrot.slane %v2712_v63, %v4503_v26  ;;  %v2735_v5 = vrot.slane %v2727_v1, %v4503_v26  ;;  %v2742_v7 = vrot.slane %v2728_v2, %v4503_v26  ;;  %3563 = vmatprep.subr.bf16.mxu0 %v4041_v0  ;;  %v3724_v63 = vld [vmem:[#allocation13 + $0x30] sm:$0xff]  }
 0x68d   : > { %v2512_v9 = vpop.f32.mrb[16].mxu0 }
 0x68e   : > { %v3305_v10 = vcombine.low %v2719_v3, %v2726_v4  ;;  %v3307_v11 = vcombine.high %v2719_v3, %v2726_v4  ;;  %v3309_v12 = vcombine.low %v2735_v5, %v2742_v7  ;;  %v3311_v13 = vcombine.high %v2735_v5, %v2742_v7  ;;  %v3531_v14 = vpop.f32.mrb[17].mxu0 }
 0x68f   : > { %v2515_v15 = vpop.f32.mrb[18].mxu0  ;;  %3564 = vmatpush3.bf16.msra.mxu0 %v3724_v63 }
 0x690   : > { %v3532_v43 = vpop.f32.mrb[19].mxu0  ;;  %v2791_v16 = vrot.slane %v3305_v10, %v4499_v8  ;;  %v2807_v17 = vrot.slane %v3307_v11, %v4499_v8  ;;  %v2823_v38 = vrot.slane %v3309_v12, %v4499_v8  ;;  %v2839_v21 = vrot.slane %v3311_v13, %v4499_v8  ;;  %3565 = vmatprep.subr.bf16.mxu0 %v4041_v0  ;;  %v3725_v15 = vld [vmem:[#allocation13 + $0x38] sm:$0xff]  }
 0x692   : > { %v2848_v29 = vcombine.high %v2791_v16, %v2807_v17  ;;  %v2880_v37 = vcombine.high %v2823_v38, %v2839_v21  ;;  %v2847_v36 = vcombine.low %v2791_v16, %v2807_v17  ;;  %v2879_v22 = vcombine.low %v2823_v38, %v2839_v21 }
 0x693   : > { %3566 = vmatpush3.bf16.msra.mxu0 %v3725_v15 }
 0x694   : > { %v2862_v23 = vrot.slane %v2848_v29, %v4503_v26  ;;  %v2894_v39 = vrot.slane %v2880_v37, %v4503_v26  ;;  %v4808_v24 = vrot.slane %v2847_v36, %v4503_v26  ;;  %v4811_v44 = vrot.slane %v2879_v22, %v4503_v26 }
 0x695   : > { %v2555_v28 = vpop.f32.mrb[44].mxu1 }
 0x696   : > { %v3537_v62 = vpop.f32.mrb[45].mxu1  ;;  %v2913_v32 = vcombine.low %v2862_v23, %v2894_v39  ;;  %v2912_v19 = vcombine.high %v4808_v24, %v4811_v44  ;;  %v2914_v53 = vcombine.high %v2862_v23, %v2894_v39  ;;  %v2911_v30 = vcombine.low %v4808_v24, %v4811_v44 }
 0x697   : > { %v2558_v33 = vpop.f32.mrb[46].mxu1 }
 0x698   : > { %2924 = vrot.lane.b32.xlu0 %v2913_v32, %s4048_s17  ;;  %2920 = vrot.lane.b32.xlu1 %v2912_v19, %s4049_s9  ;;  %v3538_v45 = vpop.f32.mrb[47].mxu1  ;;  %s543_s17 = scalar_lea.vmem [#allocation15], %s4397_s11  ;;  %s4053_s11 = smov [#allocation15]  }
 0x699   : > { %s3089_s9 = sshll.u32 %s543_s17, 4  ;;  %s4862_s9 = int_to_ptr.vmem [resolvable:$true] %s3089_s9 }
 0x69a   : > { %s3933_s27 = scalar_lea.vmem %s4862_s9, 128 }
 0x69b   : > { %p3934_p2 = scmp.ne.s32.totalorder %s4862_s9, %s3933_s27 }
 0x69c   : > { %2928 = vrot.lane.b32.xlu1 %v2914_v53, %s4047_s4 }
 0x69d   : > { %v2598_v35 = vpop.f32.mrb[20].mxu0  ;;  %p3935_p4 = pnand %p3934_p2, %p4968_p13 }
 0x69e   : > { %v2679_v31 = vcombine.low %v2512_v9, %v2598_v35  ;;  %v2680_v40 = vcombine.high %v2512_v9, %v2598_v35  ;;  %v3543_v60 = vpop.f32.mrb[21].mxu0 }
 0x69f   : > { %v2601_v25 = vpop.f32.mrb[22].mxu0  ;;  %v3760_v60 = vld [vmem:[%s473_s19] sm:$0xff]  ;;  %p3936_p9 = pneg %p3935_p4  ;;  %s3937_s19 = sshll.u32 %s4053_s11, 4  ;;  %s3938_s19 = int_to_ptr.vmem [resolvable:$false] %s3937_s19 }
 0x6a0   : > { %v3544_v41 = vpop.f32.mrb[23].mxu0  ;;  %v2687_v6 = vrot.slane %v2679_v31, %v4499_v8  ;;  %v2694_v52 = vrot.slane %v2680_v40, %v4499_v8  ;;  %s3939_s20 = scalar_lea.vmem %s3938_s19, 256  ;;  %p3940_p0 = scmp.lt.s32.totalorder %s4862_s9, %s3938_s19 }
 0x6a1   : > { %p3941_p7 = scmp.lt.s32.totalorder %s3939_s20, %s3933_s27 }
 0x6a3   : > { %p3942_p5 = por %p3941_p7, %p3940_p0 }
 0x6a5   : > { %v2641_v42 = vpop.f32.mrb[48].mxu1  ;;  %p3943_p1 = pnand %p3942_p5, %p3936_p9 }
 0x6a6   : > { %v2695_v47 = vcombine.low %v2555_v28, %v2641_v42  ;;  %v2696_v49 = vcombine.high %v2555_v28, %v2641_v42  ;;  %v3549_v50 = vpop.f32.mrb[49].mxu1 }
 0x6a7   : > { %v2644_v51 = vpop.f32.mrb[50].mxu1 }
 0x6a8   : > { %v2703_v54 = vrot.slane %v2695_v47, %v4499_v8  ;;  %v2710_v55 = vrot.slane %v2696_v49, %v4499_v8  ;;  %v3550_v56 = vpop.f32.mrb[51].mxu1 }
 0x6aa   : > { %v2743_v57 = vcombine.low %v2687_v6, %v2703_v54  ;;  %v2744_v58 = vcombine.high %v2687_v6, %v2703_v54  ;;  %v2759_v59 = vcombine.low %v2694_v52, %v2710_v55  ;;  %v2760_v61 = vcombine.high %v2694_v52, %v2710_v55 }
 0x6ac   : > { %v2751_v1 = vrot.slane %v2743_v57, %v4503_v26  ;;  %v2758_v2 = vrot.slane %v2744_v58, %v4503_v26  ;;  %v2767_v3 = vrot.slane %v2759_v59, %v4503_v26  ;;  %v2774_v4 = vrot.slane %v2760_v61, %v4503_v26 }
 0x6ae   : > { %v3306_v5 = vcombine.low %v2751_v1, %v2758_v2  ;;  %v3308_v7 = vcombine.high %v2751_v1, %v2758_v2  ;;  %v3310_v9 = vcombine.low %v2767_v3, %v2774_v4  ;;  %v3312_v10 = vcombine.high %v2767_v3, %v2774_v4 }
 0x6b0   : > { %v2798_v11 = vrot.slane %v3306_v5, %v4499_v8  ;;  %v2814_v12 = vrot.slane %v3308_v7, %v4499_v8  ;;  %v2830_v13 = vrot.slane %v3310_v9, %v4499_v8  ;;  %v2846_v14 = vrot.slane %v3312_v10, %v4499_v8 }
 0x6b2   : > { %v2863_v27 = vcombine.low %v2798_v11, %v2814_v12  ;;  %v2895_v43 = vcombine.low %v2830_v13, %v2846_v14  ;;  %v2864_v16 = vcombine.high %v2798_v11, %v2814_v12  ;;  %v2896_v17 = vcombine.high %v2830_v13, %v2846_v14 }
 0x6b4   : > { %v2871_v38 = vrot.slane %v2863_v27, %v4503_v26  ;;  %v2903_v21 = vrot.slane %v2895_v43, %v4503_v26  ;;  %v2878_v0 = vrot.slane %v2864_v16, %v4503_v26  ;;  %v2910_v18 = vrot.slane %v2896_v17, %v4503_v26 }
 0x6b6   : > { %v2916_v29 = vcombine.high %v2871_v38, %v2903_v21  ;;  %v2915_v37 = vcombine.low %v2871_v38, %v2903_v21  ;;  %v2918_v36 = vcombine.high %v2878_v0, %v2910_v18  ;;  %v2917_v22 = vcombine.low %v2878_v0, %v2910_v18 }
 0x6b8   : > { %2936 = vrot.lane.b32.xlu0 %v2916_v29, %s4044_s12  ;;  %2932 = vrot.lane.b32.xlu1 %v2915_v37, %s4046_s10  ;;  %s4965_s12 = sld [smem:[#allocation22_spill]]  ;;  %s4966_s10 = sld [smem:[#allocation31_spill]] }
 0x6bc   : > { %2944 = vrot.lane.b32.xlu0 %v2918_v36, %s4043_s15  ;;  %2940 = vrot.lane.b32.xlu1 %v2917_v22, %s4045_s30 }
 0x6be   : > { %v3313_v34 = vld [vmem:[%s4966_s10] ss:$0 sm:$0xff]  ;;  %s3323_s4 = sshll.u32 %s4965_s12, 7 }
 0x6bf   : > { %s4860_s3 = scalar_lea.hbm %s4967_s28, %s3323_s4 }
 0x70a   : > { %v2921_v8 = vpop.permute.xlu1 %2920  ;;  %v2925_v23 = vpop.permute.xlu0 %2924 }
 0x70b   : > { %v2947_v39 = vsel %vm1838_vm1, %v2911_v30, %v2921_v8 }
 0x70c   : > { %v2949_v28 = vsel %vm2948_vm2, %v2947_v39, %v2925_v23 }
 0x70e   : > { %v2929_v26 = vpop.permute.xlu1 %2928 }
 0x70f   : > { %v2951_v48 = vsel %vm2950_vm3, %v2949_v28, %v2929_v26 }
 0x72a   : > { %v2937_v62 = vpop.permute.xlu0 %2936  ;;  %v2933_v32 = vpop.permute.xlu1 %2932 }
 0x72b   : > { %v2953_v19 = vsel %vm2952_vm4, %v2951_v48, %v2933_v32 }
 0x72c   : > { %v2955_v33 = vsel %vm2954_vm5, %v2953_v19, %v2937_v62 }
 0x72e   : > { %v2945_v53 = vpop.permute.xlu0 %2944  ;;  %v2941_v24 = vpop.permute.xlu1 %2940 }
 0x72f   : > { %v2957_v44 = vsel %vm2956_vm6, %v2955_v33, %v2941_v24 }
 0x730   : > { %v2959_v30 = vsel %vm2958_vm7, %v2957_v44, %v2945_v53 }
 0x731   : > { %v2960_v45 = vpack.c.bf16 %v2959_v30, %v2959_v30 }
 0x733   : > { %3568 = vmatmul.mubr.bf16.vlgmr.msra.gmra.mrb[24].mxu0 %v2960_v45 }
 0x806   : > { %v3066_v35 = vpop.f32.mrb[24].mxu0 }
 0x807   : > { %v3067_v20 = vadd.f32 %v3313_v34, %v3066_v35  ;;  %v3569_v31 = vpop.f32.mrb[25].mxu0 }
 0x808   : > { %v3069_v40 = vpop.f32.mrb[26].mxu0 }
 0x809   : > { %v3072_v25 = vadd.f32 %v3760_v60, %v3067_v20  ;;  %v3570_v41 = vpop.f32.mrb[27].mxu0 }
 0x80b   : > { %3073 = vst [vmem:[%s543_s17] sm:$0xff] %v3072_v25 }
 0x80c   : > { %3946 = shalt.err (!%p3943_p1)
}
 0x80d   : > { %s3947_s24 = scalar_lea.hbm %s4860_s3, 128  ;;  %s3951_s12 = scalar_lea.hbm %s4967_s28, 256 }
 0x80e   : > { %p3948_p10 = scmp.ne.s32.totalorder %s4860_s3, %s3947_s24  ;;  %p3952_p3 = scmp.lt.u32.totalorder %s4860_s3, %s4967_s28 }
 0x80f   : > { %p3953_p12 = scmp.lt.u32.totalorder %s3951_s12, %s3947_s24  ;;  %p3955_p2 = scmp.lt.u32.totalorder %s3947_s24, %s4860_s3 }
 0x810   : > { %p3949_p11 = pnand %p3948_p10, %p4968_p13 }
 0x811   : > { %p3954_p6 = por %p3953_p12, %p3952_p3 }
 0x812   : > { %p3950_p8 = pneg %p3949_p11 }
 0x813   : > { %p3956_p4 = por %p3955_p2, %p3954_p6 }
 0x815   : > { %p3957_p9 = pnand %p3956_p4, %p3950_p8 }
 0x817   : > { %3960 = shalt.err (!%p3957_p9)
}
 0x818   : > { %3591 = dma.vmem_to_hbm [thread:$0]  (%p4968_p13), %s4862_s9, 128, %s4860_s3, %s3075_s6  }
 0x819 PF: > { %s3101_s10 = sand.u32 1, %s4011_s21   ;;  %p4969_p0 = scmp.ne.s32.totalorder %s4951_s16, 0 }
 0x81a   : > { %p4970_p7 = scmp.ge.s32.totalorder %s4031_s26, 2  ;;  %s3102_s4 = scalar_lea.sflag [#allocation6], %s3101_s10 }
 0x81c   : > { %p3614_p5 = pnand %p4970_p7, %p4969_p0 }
 0x81e   : > { %4006 = dma.done.wait (!%p3614_p5), %s3102_s4, 128  }
 0x81f   : > { %4008 = vsyncadd (!%p3614_p5), %s3102_s4, 4294967168  ;;  %s33_s26 = sadd.s32 1, %s4031_s26   ;;  %s4971_s29 = sld [smem:[#allocation23_spill]] }
 0x820   : > { %p30_p1 = scmp.ge.s32.totalorder %s33_s26, 4   ;;  %s4972_s21 = smov %s4015_s22 }
 0x821   : > { %s4973_s22 = smov %s4019_s23  ;;  %s4974_s23 = smov %s4303_s14 }
 0x822   : > { %s4975_s24 = smov %s4027_s25  ;;  %32 = sbr.rel (!%p30_p1) target bundleno = 20 (0x14), region = 146 }
 0x825   : > { %s4976_s25 = smov %s4971_s29 }
 0x829   :  { %3107 = vsyncpa [#allocation5], 1 }
 0x82a   :  { %3109 = vsyncpa [#allocation5 + $0x1], 1 }
 0x82b   :  { %3110 = vsyncpa [#allocation8], 1 }
 0x82c   :  { %3112 = vsyncpa [#allocation8 + $0x1], 1 }
 0x82d   :  { %3113 = vsyncpa [#allocation11], 1 }
 0x82e   :  { %3114 = vsyncpa [#allocation14], 1 }
 0x82f   :  { %3115 = vsyncpa [#allocation6], 1 }
 0x830   :  { %3117 = vsyncpa [#allocation6 + $0x1], 1 }

</bundles_post_ra>
